<compile_context>
chip_gen: v7x
topology: tpu7x:2x2x1
jax: 0.10.0
libtpu: 0.0.40
codegen_flags: <defaults>
</compile_context>

<pallas_src>
import jax
import jax.numpy as jnp
from jax.experimental import pallas as pl
from jax.experimental.pallas import tpu as pltpu

SEQ = 8
BATCH = 2
VOCAB = 16        # input_size (embedding vocab)
HIDDEN = 32       # hidden_size
OUTPUT = 16       # output_size
N_LAYERS = 2


# ----------------------------------------------------------------------------
# Fused Pallas kernel: embedding + 2-layer LSTM over the full sequence +
# decoder Linear.  Single invocation; no grid.
# ----------------------------------------------------------------------------
def _fused_lstm_kernel(ids_ref, emb_ref, h0_ref, c0_ref, w_ih_ref, w_hh_ref,
                       b_ref, w_dec_ref, b_dec_ref,
                       out_ref, hT_ref, cT_ref, hs_ref):
    TB = ids_ref.shape[0]                                   # T * B
    V = emb_ref.shape[0]
    L, B, H = h0_ref.shape
    T = TB // B

    # ---- Embedding gather fused as a one-hot MXU matmul (off-chain). ----
    ids = ids_ref[...]                                      # (TB, 1) int32
    cols = jax.lax.broadcasted_iota(jnp.int32, (TB, V), 1)
    one_hot = jnp.where(cols == ids, 1.0, 0.0).astype(jnp.bfloat16)   # (TB, V)
    x = jnp.dot(one_hot, emb_ref[...],
                preferred_element_type=jnp.float32)         # (TB, H) f32
    x_bf = x.astype(jnp.bfloat16)                           # lossless (one-hot pick)

    for l in range(L):
        w_ih = w_ih_ref[l]                                  # (H, 4H) bf16
        w_hh = w_hh_ref[l]                                  # (H, 4H) bf16
        b = b_ref[l]                                        # (1, 4H) f32

        # Batched input projection for the whole sequence: ONE matmul + fused
        # bias.  Off the recurrent dependency chain.
        gx = jnp.dot(x_bf, w_ih,
                     preferred_element_type=jnp.float32) + b          # (TB, 4H)

        h = h0_ref[l]                                       # (B, H) f32
        c = c0_ref[l]                                       # (B, H) f32
        for t in range(T):                                  # T=8, fully unrolled
            gates = gx[t * B:(t + 1) * B, :] + jnp.dot(
                h.astype(jnp.bfloat16), w_hh,
                preferred_element_type=jnp.float32)         # (B, 4H) f32
            # Kernel gate order [i, f, o, g]: one contiguous sigmoid (3H lanes)
            # + one tanh on the g slice only.
            sio = jax.nn.sigmoid(gates[:, :3 * H])
            g_g = jnp.tanh(gates[:, 3 * H:])
            i_g = sio[:, 0 * H:1 * H]
            f_g = sio[:, 1 * H:2 * H]
            o_g = sio[:, 2 * H:3 * H]
            c = f_g * c + i_g * g_g
            h = o_g * jnp.tanh(c)
            # Off-chain staging store; consumed below as one batched LHS.
            hs_ref[pl.ds(t * B, B), :] = h
        hT_ref[l] = h                                       # written once/layer
        cT_ref[l] = c
        x_bf = hs_ref[...].astype(jnp.bfloat16)             # (TB, H) next-layer input
        # TODO(synk): nn.LSTM inter-layer dropout (p=0.5) is active only in
        # training mode; eval-mode forward is the identity, so it is omitted.

    # ---- Fused decoder: ONE batched matmul + ONE lane-dense store. ----
    out_ref[...] = (jnp.dot(x_bf, w_dec_ref[...],
                            preferred_element_type=jnp.float32)
                    + b_dec_ref[...])


def fused_lstm(ids2d, emb, h0, c0, w_ih, w_hh, b, w_dec, b_dec):
    TB = ids2d.shape[0]
    V, H = emb.shape
    L, B, _ = h0.shape
    O = w_dec.shape[-1]
    out, hT, cT = pl.pallas_call(
        _fused_lstm_kernel,
        out_shape=(
            jax.ShapeDtypeStruct((TB, O), jnp.float32),
            jax.ShapeDtypeStruct((L, B, H), jnp.float32),
            jax.ShapeDtypeStruct((L, B, H), jnp.float32),
        ),
        in_specs=[
            pl.BlockSpec((TB, 1), lambda: (0, 0)),             # token ids
            pl.BlockSpec((V, H), lambda: (0, 0)),              # embedding (bf16)
            pl.BlockSpec((L, B, H), lambda: (0, 0, 0)),        # h0
            pl.BlockSpec((L, B, H), lambda: (0, 0, 0)),        # c0
            pl.BlockSpec((L, H, 4 * H), lambda: (0, 0, 0)),    # W_ih^T [i,f,o,g] bf16
            pl.BlockSpec((L, H, 4 * H), lambda: (0, 0, 0)),    # W_hh^T [i,f,o,g] bf16
            pl.BlockSpec((L, 1, 4 * H), lambda: (0, 0, 0)),    # b_ih + b_hh (f32)
            pl.BlockSpec((H, O), lambda: (0, 0)),              # W_dec^T bf16
            pl.BlockSpec((1, O), lambda: (0, 0)),              # b_dec (f32)
        ],
        out_specs=(
            pl.BlockSpec((TB, O), lambda: (0, 0)),             # decoder out
            pl.BlockSpec((L, B, H), lambda: (0, 0, 0)),        # final h
            pl.BlockSpec((L, B, H), lambda: (0, 0, 0)),        # final c
        ),
        scratch_shapes=[pltpu.VMEM((TB, H), jnp.float32)],     # per-step h staging
    )(ids2d, emb, h0, c0, w_ih, w_hh, b, w_dec, b_dec)
    return out, hT, cT


# ----------------------------------------------------------------------------
# Parameters in PyTorch layout + one-time repack into kernel layout.
# ----------------------------------------------------------------------------
def init_params(key):
    ks = jax.random.split(key, 3 + 4 * N_LAYERS)
    params = {
        "embedding": 0.1 * jax.random.normal(ks[0], (VOCAB, HIDDEN), jnp.float32),
        "w_dec": 0.1 * jax.random.normal(ks[1], (OUTPUT, HIDDEN), jnp.float32),  # (out,in)
        "b_dec": 0.1 * jax.random.normal(ks[2], (OUTPUT,), jnp.float32),
    }
    w_ih, w_hh, b_ih, b_hh = [], [], [], []
    for l in range(N_LAYERS):
        k0, k1, k2, k3 = ks[3 + 4 * l: 3 + 4 * (l + 1)]
        # PyTorch layout: (4H, in), gate order [i, f, g, o].
        w_ih.append(0.1 * jax.random.normal(k0, (4 * HIDDEN, HIDDEN), jnp.float32))
        w_hh.append(0.1 * jax.random.normal(k1, (4 * HIDDEN, HIDDEN), jnp.float32))
        b_ih.append(0.1 * jax.random.normal(k2, (4 * HIDDEN,), jnp.float32))
        b_hh.append(0.1 * jax.random.normal(k3, (4 * HIDDEN,), jnp.float32))
    params["w_ih"] = jnp.stack(w_ih)   # (L, 4H, H)
    params["w_hh"] = jnp.stack(w_hh)   # (L, 4H, H)
    params["b_ih"] = jnp.stack(b_ih)   # (L, 4H)
    params["b_hh"] = jnp.stack(b_hh)   # (L, 4H)
    return params


_GATE_PERM = (0, 1, 3, 2)   # PyTorch [i, f, g, o] -> kernel [i, f, o, g]


def prepare_kernel_params(params):
    """One-time repack: transpose, permute gate blocks, cast MXU operands bf16."""
    perm = jnp.asarray(_GATE_PERM)

    def reorder_w(w):        # (L, 4H, H) -> (L, H, 4H), kernel gate order, bf16
        w4 = w.reshape(N_LAYERS, 4, HIDDEN, HIDDEN)[:, perm]
        return jnp.transpose(w4.reshape(N_LAYERS, 4 * HIDDEN, HIDDEN),
                             (0, 2, 1)).astype(jnp.bfloat16)

    def reorder_b(b):        # (L, 4H) -> (L, 1, 4H), kernel gate order, f32
        return b.reshape(N_LAYERS, 4, HIDDEN)[:, perm].reshape(
            N_LAYERS, 1, 4 * HIDDEN)

    return {
        "emb": params["embedding"].astype(jnp.bfloat16),
        "w_ih": reorder_w(params["w_ih"]),
        "w_hh": reorder_w(params["w_hh"]),
        "b": reorder_b(params["b_ih"]) + reorder_b(params["b_hh"]),
        "w_dec": params["w_dec"].T.astype(jnp.bfloat16),          # (H, O)
        "b_dec": params["b_dec"].reshape(1, OUTPUT),
    }


@jax.jit
def lstm_forward(kparams, inp, h0, c0):
    T, B = inp.shape
    # Row-major (time-major) flatten matches PyTorch output.view(T*B, H).
    ids2d = inp.reshape(T * B, 1)
    out, hT, cT = fused_lstm(ids2d, kparams["emb"], h0, c0,
                             kparams["w_ih"], kparams["w_hh"], kparams["b"],
                             kparams["w_dec"], kparams["b_dec"])
    return out, (hT, cT)


# ----------------------------------------------------------------------------
# Pure-JAX reference (PyTorch layout / f32, silent correctness check)
# ----------------------------------------------------------------------------
def lstm_forward_ref(params, inp, h0, c0):
    x = params["embedding"][inp]                    # (T, B, H)
    H = HIDDEN
    h_fin, c_fin = [], []
    for l in range(N_LAYERS):
        w_ih = params["w_ih"][l]                    # (4H, H)
        w_hh = params["w_hh"][l]
        b = params["b_ih"][l] + params["b_hh"][l]   # (4H,)

        def step(carry, xt):
            h, c = carry
            gates = xt @ w_ih.T + h @ w_hh.T + b
            i = jax.nn.sigmoid(gates[:, 0 * H:1 * H])
            f = jax.nn.sigmoid(gates[:, 1 * H:2 * H])
            g = jnp.tanh(gates[:, 2 * H:3 * H])
            o = jax.nn.sigmoid(gates[:, 3 * H:4 * H])
            c_new = f * c + i * g
            h_new = o * jnp.tanh(c_new)
            return (h_new, c_new), h_new

        (h_l, c_l), x = jax.lax.scan(step, (h0[l], c0[l]), x)
        h_fin.append(h_l)
        c_fin.append(c_l)
    T, B, _ = x.shape
    out = x.reshape(T * B, H) @ params["w_dec"].T + params["b_dec"]
    return out, (jnp.stack(h_fin), jnp.stack(c_fin))


if __name__ == "__main__":
    key = jax.random.PRNGKey(0)
    pkey, ikey = jax.random.split(key)
    params = init_params(pkey)
    kparams = prepare_kernel_params(params)

    inp = jax.random.randint(ikey, (SEQ, BATCH), 0, VOCAB, dtype=jnp.int32)
    h0 = jnp.zeros((N_LAYERS, BATCH, HIDDEN), jnp.float32)
    c0 = jnp.zeros((N_LAYERS, BATCH, HIDDEN), jnp.float32)

    out, (hT, cT) = lstm_forward(kparams, inp, h0, c0)
    jax.block_until_ready((out, hT, cT))

    out_r, (hT_r, cT_r) = lstm_forward_ref(params, inp, h0, c0)
    assert out.shape == (SEQ * BATCH, OUTPUT)
    assert hT.shape == (N_LAYERS, BATCH, HIDDEN)
    assert cT.shape == (N_LAYERS, BATCH, HIDDEN)
    # bf16 MXU operands (f32 accumulation) -> looser tolerance than pure f32.
    assert jnp.allclose(out, out_r, atol=2e-2)
    assert jnp.allclose(hT, hT_r, atol=2e-2)
    assert jnp.allclose(cT, cT_r, atol=2e-2)

    print("KERNEL_OK")
</pallas_src>

<mosaic_0001>
module attributes {stable_mosaic.version = 11 : i64} {
  func.func @_fused_lstm_kernel(%arg0: memref<16x1xi32, #tpu.memory_space<vmem>>, %arg1: memref<16x32xbf16, #tpu.memory_space<vmem>>, %arg2: memref<2x2x32xf32, #tpu.memory_space<vmem>>, %arg3: memref<2x2x32xf32, #tpu.memory_space<vmem>>, %arg4: memref<2x32x128xbf16, #tpu.memory_space<vmem>>, %arg5: memref<2x32x128xbf16, #tpu.memory_space<vmem>>, %arg6: memref<2x1x128xf32, #tpu.memory_space<vmem>>, %arg7: memref<32x16xbf16, #tpu.memory_space<vmem>>, %arg8: memref<1x16xf32, #tpu.memory_space<vmem>>, %arg9: memref<16x16xf32, #tpu.memory_space<vmem>>, %arg10: memref<2x2x32xf32, #tpu.memory_space<vmem>>, %arg11: memref<2x2x32xf32, #tpu.memory_space<vmem>>, %arg12: memref<16x32xf32, #tpu.memory_space<vmem>>) attributes {dimension_semantics = [], scalar_prefetch = 0 : i64, scratch_operands = 1 : i64, tpu.core_type = #tpu.core_type<tc>} {
    %c0 = arith.constant 0 : index
    %c0_0 = arith.constant 0 : index
    %0 = vector.load %arg0[%c0, %c0_0] : memref<16x1xi32, #tpu.memory_space<vmem>>, vector<16x1xi32>
    %1 = tpu.iota {dimensions = array<i32: 1>} : vector<16x16xi32>
    %2 = vector.broadcast %0 : vector<16x1xi32> to vector<16x16xi32>
    %3 = arith.cmpi eq, %1, %2 : vector<16x16xi32>
    %cst = arith.constant 1.000000e+00 : f32
    %cst_1 = arith.constant 0.000000e+00 : f32
    %4 = vector.broadcast %cst : f32 to vector<16x16xf32>
    %5 = vector.broadcast %cst_1 : f32 to vector<16x16xf32>
    %6 = arith.select %3, %4, %5 : vector<16x16xi1>, vector<16x16xf32>
    %7 = arith.truncf %6 : vector<16x16xf32> to vector<16x16xbf16>
    %c0_2 = arith.constant 0 : index
    %c0_3 = arith.constant 0 : index
    %8 = vector.load %arg1[%c0_2, %c0_3] : memref<16x32xbf16, #tpu.memory_space<vmem>>, vector<16x32xbf16>
    %cst_4 = arith.constant dense<0.000000e+00> : vector<16x32xf32>
    %9 = tpu.matmul %7, %8, %cst_4 {dimension_numbers = #tpu.dot_dimension_numbers<[1], [0], [0], [1], [0, 0, 1, 1], [], []>} : vector<16x16xbf16>, vector<16x32xbf16>, vector<16x32xf32> -> vector<16x32xf32>
    %10 = arith.truncf %9 : vector<16x32xf32> to vector<16x32xbf16>
    %c0_5 = arith.constant 0 : index
    %c0_6 = arith.constant 0 : index
    %c0_7 = arith.constant 0 : index
    %11 = vector.load %arg4[%c0_5, %c0_6, %c0_7] : memref<2x32x128xbf16, #tpu.memory_space<vmem>>, vector<1x32x128xbf16>
    %12 = vector.shape_cast %11 : vector<1x32x128xbf16> to vector<32x128xbf16>
    %c0_8 = arith.constant 0 : index
    %c0_9 = arith.constant 0 : index
    %c0_10 = arith.constant 0 : index
    %13 = vector.load %arg5[%c0_8, %c0_9, %c0_10] : memref<2x32x128xbf16, #tpu.memory_space<vmem>>, vector<1x32x128xbf16>
    %14 = vector.shape_cast %13 : vector<1x32x128xbf16> to vector<32x128xbf16>
    %c0_11 = arith.constant 0 : index
    %c0_12 = arith.constant 0 : index
    %c0_13 = arith.constant 0 : index
    %15 = vector.load %arg6[%c0_11, %c0_12, %c0_13] : memref<2x1x128xf32, #tpu.memory_space<vmem>>, vector<1x1x128xf32>
    %16 = vector.shape_cast %15 : vector<1x1x128xf32> to vector<1x128xf32>
    %cst_14 = arith.constant dense<0.000000e+00> : vector<16x128xf32>
    %17 = tpu.matmul %10, %12, %cst_14 {dimension_numbers = #tpu.dot_dimension_numbers<[1], [0], [0], [1], [0, 0, 1, 1], [], []>} : vector<16x32xbf16>, vector<32x128xbf16>, vector<16x128xf32> -> vector<16x128xf32>
    %18 = vector.broadcast %16 : vector<1x128xf32> to vector<16x128xf32>
    %19 = arith.addf %17, %18 : vector<16x128xf32>
    %c0_15 = arith.constant 0 : index
    %c0_16 = arith.constant 0 : index
    %c0_17 = arith.constant 0 : index
    %20 = vector.load %arg2[%c0_15, %c0_16, %c0_17] : memref<2x2x32xf32, #tpu.memory_space<vmem>>, vector<1x2x32xf32>
    %21 = vector.shape_cast %20 : vector<1x2x32xf32> to vector<2x32xf32>
    %c0_18 = arith.constant 0 : index
    %c0_19 = arith.constant 0 : index
    %c0_20 = arith.constant 0 : index
    %22 = vector.load %arg3[%c0_18, %c0_19, %c0_20] : memref<2x2x32xf32, #tpu.memory_space<vmem>>, vector<1x2x32xf32>
    %23 = vector.shape_cast %22 : vector<1x2x32xf32> to vector<2x32xf32>
    %24 = vector.extract_strided_slice %19 {offsets = [0, 0], sizes = [2, 128], strides = [1, 1]} : vector<16x128xf32> to vector<2x128xf32>
    %25 = arith.truncf %21 : vector<2x32xf32> to vector<2x32xbf16>
    %cst_21 = arith.constant dense<0.000000e+00> : vector<2x128xf32>
    %26 = tpu.matmul %25, %14, %cst_21 {dimension_numbers = #tpu.dot_dimension_numbers<[1], [0], [0], [1], [0, 0, 1, 1], [], []>} : vector<2x32xbf16>, vector<32x128xbf16>, vector<2x128xf32> -> vector<2x128xf32>
    %27 = arith.addf %24, %26 : vector<2x128xf32>
    %28 = vector.extract_strided_slice %27 {offsets = [0, 0], sizes = [2, 96], strides = [1, 1]} : vector<2x128xf32> to vector<2x96xf32>
    %29 = arith.negf %28 : vector<2x96xf32>
    %30 = math.exp %29 : vector<2x96xf32>
    %cst_22 = arith.constant 1.000000e+00 : f32
    %31 = vector.broadcast %cst_22 : f32 to vector<2x96xf32>
    %32 = arith.addf %31, %30 : vector<2x96xf32>
    %33 = arith.divf %31, %32 : vector<2x96xf32>
    %34 = vector.extract_strided_slice %27 {offsets = [0, 96], sizes = [2, 32], strides = [1, 1]} : vector<2x128xf32> to vector<2x32xf32>
    %35 = math.tanh %34 : vector<2x32xf32>
    %36 = vector.extract_strided_slice %33 {offsets = [0, 0], sizes = [2, 32], strides = [1, 1]} : vector<2x96xf32> to vector<2x32xf32>
    %37 = vector.extract_strided_slice %33 {offsets = [0, 32], sizes = [2, 32], strides = [1, 1]} : vector<2x96xf32> to vector<2x32xf32>
    %38 = vector.extract_strided_slice %33 {offsets = [0, 64], sizes = [2, 32], strides = [1, 1]} : vector<2x96xf32> to vector<2x32xf32>
    %39 = arith.mulf %37, %23 : vector<2x32xf32>
    %40 = arith.mulf %36, %35 : vector<2x32xf32>
    %41 = arith.addf %39, %40 : vector<2x32xf32>
    %42 = math.tanh %41 : vector<2x32xf32>
    %43 = arith.mulf %38, %42 : vector<2x32xf32>
    %c0_23 = arith.constant 0 : index
    %c0_24 = arith.constant 0 : index
    %44 = vector.load %arg12[%c0_23, %c0_24] : memref<16x32xf32, #tpu.memory_space<vmem>>, vector<2x32xf32>
    tpu.vector_store %arg12[%c0_23, %c0_24], %43 {strides = array<i32>} : memref<16x32xf32, #tpu.memory_space<vmem>>, vector<2x32xf32>,
    %45 = vector.extract_strided_slice %19 {offsets = [2, 0], sizes = [2, 128], strides = [1, 1]} : vector<16x128xf32> to vector<2x128xf32>
    %46 = arith.truncf %43 : vector<2x32xf32> to vector<2x32xbf16>
    %cst_25 = arith.constant dense<0.000000e+00> : vector<2x128xf32>
    %47 = tpu.matmul %46, %14, %cst_25 {dimension_numbers = #tpu.dot_dimension_numbers<[1], [0], [0], [1], [0, 0, 1, 1], [], []>} : vector<2x32xbf16>, vector<32x128xbf16>, vector<2x128xf32> -> vector<2x128xf32>
    %48 = arith.addf %45, %47 : vector<2x128xf32>
    %49 = vector.extract_strided_slice %48 {offsets = [0, 0], sizes = [2, 96], strides = [1, 1]} : vector<2x128xf32> to vector<2x96xf32>
    %50 = arith.negf %49 : vector<2x96xf32>
    %51 = math.exp %50 : vector<2x96xf32>
    %cst_26 = arith.constant 1.000000e+00 : f32
    %52 = vector.broadcast %cst_26 : f32 to vector<2x96xf32>
    %53 = arith.addf %52, %51 : vector<2x96xf32>
    %54 = arith.divf %52, %53 : vector<2x96xf32>
    %55 = vector.extract_strided_slice %48 {offsets = [0, 96], sizes = [2, 32], strides = [1, 1]} : vector<2x128xf32> to vector<2x32xf32>
    %56 = math.tanh %55 : vector<2x32xf32>
    %57 = vector.extract_strided_slice %54 {offsets = [0, 0], sizes = [2, 32], strides = [1, 1]} : vector<2x96xf32> to vector<2x32xf32>
    %58 = vector.extract_strided_slice %54 {offsets = [0, 32], sizes = [2, 32], strides = [1, 1]} : vector<2x96xf32> to vector<2x32xf32>
    %59 = vector.extract_strided_slice %54 {offsets = [0, 64], sizes = [2, 32], strides = [1, 1]} : vector<2x96xf32> to vector<2x32xf32>
    %60 = arith.mulf %58, %41 : vector<2x32xf32>
    %61 = arith.mulf %57, %56 : vector<2x32xf32>
    %62 = arith.addf %60, %61 : vector<2x32xf32>
    %63 = math.tanh %62 : vector<2x32xf32>
    %64 = arith.mulf %59, %63 : vector<2x32xf32>
    %c2 = arith.constant 2 : index
    %c0_27 = arith.constant 0 : index
    %65 = vector.load %arg12[%c2, %c0_27] : memref<16x32xf32, #tpu.memory_space<vmem>>, vector<2x32xf32>
    tpu.vector_store %arg12[%c2, %c0_27], %64 {strides = array<i32>} : memref<16x32xf32, #tpu.memory_space<vmem>>, vector<2x32xf32>,
    %66 = vector.extract_strided_slice %19 {offsets = [4, 0], sizes = [2, 128], strides = [1, 1]} : vector<16x128xf32> to vector<2x128xf32>
    %67 = arith.truncf %64 : vector<2x32xf32> to vector<2x32xbf16>
    %cst_28 = arith.constant dense<0.000000e+00> : vector<2x128xf32>
    %68 = tpu.matmul %67, %14, %cst_28 {dimension_numbers = #tpu.dot_dimension_numbers<[1], [0], [0], [1], [0, 0, 1, 1], [], []>} : vector<2x32xbf16>, vector<32x128xbf16>, vector<2x128xf32> -> vector<2x128xf32>
    %69 = arith.addf %66, %68 : vector<2x128xf32>
    %70 = vector.extract_strided_slice %69 {offsets = [0, 0], sizes = [2, 96], strides = [1, 1]} : vector<2x128xf32> to vector<2x96xf32>
    %71 = arith.negf %70 : vector<2x96xf32>
    %72 = math.exp %71 : vector<2x96xf32>
    %cst_29 = arith.constant 1.000000e+00 : f32
    %73 = vector.broadcast %cst_29 : f32 to vector<2x96xf32>
    %74 = arith.addf %73, %72 : vector<2x96xf32>
    %75 = arith.divf %73, %74 : vector<2x96xf32>
    %76 = vector.extract_strided_slice %69 {offsets = [0, 96], sizes = [2, 32], strides = [1, 1]} : vector<2x128xf32> to vector<2x32xf32>
    %77 = math.tanh %76 : vector<2x32xf32>
    %78 = vector.extract_strided_slice %75 {offsets = [0, 0], sizes = [2, 32], strides = [1, 1]} : vector<2x96xf32> to vector<2x32xf32>
    %79 = vector.extract_strided_slice %75 {offsets = [0, 32], sizes = [2, 32], strides = [1, 1]} : vector<2x96xf32> to vector<2x32xf32>
    %80 = vector.extract_strided_slice %75 {offsets = [0, 64], sizes = [2, 32], strides = [1, 1]} : vector<2x96xf32> to vector<2x32xf32>
    %81 = arith.mulf %79, %62 : vector<2x32xf32>
    %82 = arith.mulf %78, %77 : vector<2x32xf32>
    %83 = arith.addf %81, %82 : vector<2x32xf32>
    %84 = math.tanh %83 : vector<2x32xf32>
    %85 = arith.mulf %80, %84 : vector<2x32xf32>
    %c4 = arith.constant 4 : index
    %c0_30 = arith.constant 0 : index
    %86 = vector.load %arg12[%c4, %c0_30] : memref<16x32xf32, #tpu.memory_space<vmem>>, vector<2x32xf32>
    tpu.vector_store %arg12[%c4, %c0_30], %85 {strides = array<i32>} : memref<16x32xf32, #tpu.memory_space<vmem>>, vector<2x32xf32>,
    %87 = vector.extract_strided_slice %19 {offsets = [6, 0], sizes = [2, 128], strides = [1, 1]} : vector<16x128xf32> to vector<2x128xf32>
    %88 = arith.truncf %85 : vector<2x32xf32> to vector<2x32xbf16>
    %cst_31 = arith.constant dense<0.000000e+00> : vector<2x128xf32>
    %89 = tpu.matmul %88, %14, %cst_31 {dimension_numbers = #tpu.dot_dimension_numbers<[1], [0], [0], [1], [0, 0, 1, 1], [], []>} : vector<2x32xbf16>, vector<32x128xbf16>, vector<2x128xf32> -> vector<2x128xf32>
    %90 = arith.addf %87, %89 : vector<2x128xf32>
    %91 = vector.extract_strided_slice %90 {offsets = [0, 0], sizes = [2, 96], strides = [1, 1]} : vector<2x128xf32> to vector<2x96xf32>
    %92 = arith.negf %91 : vector<2x96xf32>
    %93 = math.exp %92 : vector<2x96xf32>
    %cst_32 = arith.constant 1.000000e+00 : f32
    %94 = vector.broadcast %cst_32 : f32 to vector<2x96xf32>
    %95 = arith.addf %94, %93 : vector<2x96xf32>
    %96 = arith.divf %94, %95 : vector<2x96xf32>
    %97 = vector.extract_strided_slice %90 {offsets = [0, 96], sizes = [2, 32], strides = [1, 1]} : vector<2x128xf32> to vector<2x32xf32>
    %98 = math.tanh %97 : vector<2x32xf32>
    %99 = vector.extract_strided_slice %96 {offsets = [0, 0], sizes = [2, 32], strides = [1, 1]} : vector<2x96xf32> to vector<2x32xf32>
    %100 = vector.extract_strided_slice %96 {offsets = [0, 32], sizes = [2, 32], strides = [1, 1]} : vector<2x96xf32> to vector<2x32xf32>
    %101 = vector.extract_strided_slice %96 {offsets = [0, 64], sizes = [2, 32], strides = [1, 1]} : vector<2x96xf32> to vector<2x32xf32>
    %102 = arith.mulf %100, %83 : vector<2x32xf32>
    %103 = arith.mulf %99, %98 : vector<2x32xf32>
    %104 = arith.addf %102, %103 : vector<2x32xf32>
    %105 = math.tanh %104 : vector<2x32xf32>
    %106 = arith.mulf %101, %105 : vector<2x32xf32>
    %c6 = arith.constant 6 : index
    %c0_33 = arith.constant 0 : index
    %107 = vector.load %arg12[%c6, %c0_33] : memref<16x32xf32, #tpu.memory_space<vmem>>, vector<2x32xf32>
    tpu.vector_store %arg12[%c6, %c0_33], %106 {strides = array<i32>} : memref<16x32xf32, #tpu.memory_space<vmem>>, vector<2x32xf32>,
    %108 = vector.extract_strided_slice %19 {offsets = [8, 0], sizes = [2, 128], strides = [1, 1]} : vector<16x128xf32> to vector<2x128xf32>
    %109 = arith.truncf %106 : vector<2x32xf32> to vector<2x32xbf16>
    %cst_34 = arith.constant dense<0.000000e+00> : vector<2x128xf32>
    %110 = tpu.matmul %109, %14, %cst_34 {dimension_numbers = #tpu.dot_dimension_numbers<[1], [0], [0], [1], [0, 0, 1, 1], [], []>} : vector<2x32xbf16>, vector<32x128xbf16>, vector<2x128xf32> -> vector<2x128xf32>
    %111 = arith.addf %108, %110 : vector<2x128xf32>
    %112 = vector.extract_strided_slice %111 {offsets = [0, 0], sizes = [2, 96], strides = [1, 1]} : vector<2x128xf32> to vector<2x96xf32>
    %113 = arith.negf %112 : vector<2x96xf32>
    %114 = math.exp %113 : vector<2x96xf32>
    %cst_35 = arith.constant 1.000000e+00 : f32
    %115 = vector.broadcast %cst_35 : f32 to vector<2x96xf32>
    %116 = arith.addf %115, %114 : vector<2x96xf32>
    %117 = arith.divf %115, %116 : vector<2x96xf32>
    %118 = vector.extract_strided_slice %111 {offsets = [0, 96], sizes = [2, 32], strides = [1, 1]} : vector<2x128xf32> to vector<2x32xf32>
    %119 = math.tanh %118 : vector<2x32xf32>
    %120 = vector.extract_strided_slice %117 {offsets = [0, 0], sizes = [2, 32], strides = [1, 1]} : vector<2x96xf32> to vector<2x32xf32>
    %121 = vector.extract_strided_slice %117 {offsets = [0, 32], sizes = [2, 32], strides = [1, 1]} : vector<2x96xf32> to vector<2x32xf32>
    %122 = vector.extract_strided_slice %117 {offsets = [0, 64], sizes = [2, 32], strides = [1, 1]} : vector<2x96xf32> to vector<2x32xf32>
    %123 = arith.mulf %121, %104 : vector<2x32xf32>
    %124 = arith.mulf %120, %119 : vector<2x32xf32>
    %125 = arith.addf %123, %124 : vector<2x32xf32>
    %126 = math.tanh %125 : vector<2x32xf32>
    %127 = arith.mulf %122, %126 : vector<2x32xf32>
    %c8 = arith.constant 8 : index
    %c0_36 = arith.constant 0 : index
    %128 = vector.load %arg12[%c8, %c0_36] : memref<16x32xf32, #tpu.memory_space<vmem>>, vector<2x32xf32>
    tpu.vector_store %arg12[%c8, %c0_36], %127 {strides = array<i32>} : memref<16x32xf32, #tpu.memory_space<vmem>>, vector<2x32xf32>,
    %129 = vector.extract_strided_slice %19 {offsets = [10, 0], sizes = [2, 128], strides = [1, 1]} : vector<16x128xf32> to vector<2x128xf32>
    %130 = arith.truncf %127 : vector<2x32xf32> to vector<2x32xbf16>
    %cst_37 = arith.constant dense<0.000000e+00> : vector<2x128xf32>
    %131 = tpu.matmul %130, %14, %cst_37 {dimension_numbers = #tpu.dot_dimension_numbers<[1], [0], [0], [1], [0, 0, 1, 1], [], []>} : vector<2x32xbf16>, vector<32x128xbf16>, vector<2x128xf32> -> vector<2x128xf32>
    %132 = arith.addf %129, %131 : vector<2x128xf32>
    %133 = vector.extract_strided_slice %132 {offsets = [0, 0], sizes = [2, 96], strides = [1, 1]} : vector<2x128xf32> to vector<2x96xf32>
    %134 = arith.negf %133 : vector<2x96xf32>
    %135 = math.exp %134 : vector<2x96xf32>
    %cst_38 = arith.constant 1.000000e+00 : f32
    %136 = vector.broadcast %cst_38 : f32 to vector<2x96xf32>
    %137 = arith.addf %136, %135 : vector<2x96xf32>
    %138 = arith.divf %136, %137 : vector<2x96xf32>
    %139 = vector.extract_strided_slice %132 {offsets = [0, 96], sizes = [2, 32], strides = [1, 1]} : vector<2x128xf32> to vector<2x32xf32>
    %140 = math.tanh %139 : vector<2x32xf32>
    %141 = vector.extract_strided_slice %138 {offsets = [0, 0], sizes = [2, 32], strides = [1, 1]} : vector<2x96xf32> to vector<2x32xf32>
    %142 = vector.extract_strided_slice %138 {offsets = [0, 32], sizes = [2, 32], strides = [1, 1]} : vector<2x96xf32> to vector<2x32xf32>
    %143 = vector.extract_strided_slice %138 {offsets = [0, 64], sizes = [2, 32], strides = [1, 1]} : vector<2x96xf32> to vector<2x32xf32>
    %144 = arith.mulf %142, %125 : vector<2x32xf32>
    %145 = arith.mulf %141, %140 : vector<2x32xf32>
    %146 = arith.addf %144, %145 : vector<2x32xf32>
    %147 = math.tanh %146 : vector<2x32xf32>
    %148 = arith.mulf %143, %147 : vector<2x32xf32>
    %c10 = arith.constant 10 : index
    %c0_39 = arith.constant 0 : index
    %149 = vector.load %arg12[%c10, %c0_39] : memref<16x32xf32, #tpu.memory_space<vmem>>, vector<2x32xf32>
    tpu.vector_store %arg12[%c10, %c0_39], %148 {strides = array<i32>} : memref<16x32xf32, #tpu.memory_space<vmem>>, vector<2x32xf32>,
    %150 = vector.extract_strided_slice %19 {offsets = [12, 0], sizes = [2, 128], strides = [1, 1]} : vector<16x128xf32> to vector<2x128xf32>
    %151 = arith.truncf %148 : vector<2x32xf32> to vector<2x32xbf16>
    %cst_40 = arith.constant dense<0.000000e+00> : vector<2x128xf32>
    %152 = tpu.matmul %151, %14, %cst_40 {dimension_numbers = #tpu.dot_dimension_numbers<[1], [0], [0], [1], [0, 0, 1, 1], [], []>} : vector<2x32xbf16>, vector<32x128xbf16>, vector<2x128xf32> -> vector<2x128xf32>
    %153 = arith.addf %150, %152 : vector<2x128xf32>
    %154 = vector.extract_strided_slice %153 {offsets = [0, 0], sizes = [2, 96], strides = [1, 1]} : vector<2x128xf32> to vector<2x96xf32>
    %155 = arith.negf %154 : vector<2x96xf32>
    %156 = math.exp %155 : vector<2x96xf32>
    %cst_41 = arith.constant 1.000000e+00 : f32
    %157 = vector.broadcast %cst_41 : f32 to vector<2x96xf32>
    %158 = arith.addf %157, %156 : vector<2x96xf32>
    %159 = arith.divf %157, %158 : vector<2x96xf32>
    %160 = vector.extract_strided_slice %153 {offsets = [0, 96], sizes = [2, 32], strides = [1, 1]} : vector<2x128xf32> to vector<2x32xf32>
    %161 = math.tanh %160 : vector<2x32xf32>
    %162 = vector.extract_strided_slice %159 {offsets = [0, 0], sizes = [2, 32], strides = [1, 1]} : vector<2x96xf32> to vector<2x32xf32>
    %163 = vector.extract_strided_slice %159 {offsets = [0, 32], sizes = [2, 32], strides = [1, 1]} : vector<2x96xf32> to vector<2x32xf32>
    %164 = vector.extract_strided_slice %159 {offsets = [0, 64], sizes = [2, 32], strides = [1, 1]} : vector<2x96xf32> to vector<2x32xf32>
    %165 = arith.mulf %163, %146 : vector<2x32xf32>
    %166 = arith.mulf %162, %161 : vector<2x32xf32>
    %167 = arith.addf %165, %166 : vector<2x32xf32>
    %168 = math.tanh %167 : vector<2x32xf32>
    %169 = arith.mulf %164, %168 : vector<2x32xf32>
    %c12 = arith.constant 12 : index
    %c0_42 = arith.constant 0 : index
    %170 = vector.load %arg12[%c12, %c0_42] : memref<16x32xf32, #tpu.memory_space<vmem>>, vector<2x32xf32>
    tpu.vector_store %arg12[%c12, %c0_42], %169 {strides = array<i32>} : memref<16x32xf32, #tpu.memory_space<vmem>>, vector<2x32xf32>,
    %171 = vector.extract_strided_slice %19 {offsets = [14, 0], sizes = [2, 128], strides = [1, 1]} : vector<16x128xf32> to vector<2x128xf32>
    %172 = arith.truncf %169 : vector<2x32xf32> to vector<2x32xbf16>
    %cst_43 = arith.constant dense<0.000000e+00> : vector<2x128xf32>
    %173 = tpu.matmul %172, %14, %cst_43 {dimension_numbers = #tpu.dot_dimension_numbers<[1], [0], [0], [1], [0, 0, 1, 1], [], []>} : vector<2x32xbf16>, vector<32x128xbf16>, vector<2x128xf32> -> vector<2x128xf32>
    %174 = arith.addf %171, %173 : vector<2x128xf32>
    %175 = vector.extract_strided_slice %174 {offsets = [0, 0], sizes = [2, 96], strides = [1, 1]} : vector<2x128xf32> to vector<2x96xf32>
    %176 = arith.negf %175 : vector<2x96xf32>
    %177 = math.exp %176 : vector<2x96xf32>
    %cst_44 = arith.constant 1.000000e+00 : f32
    %178 = vector.broadcast %cst_44 : f32 to vector<2x96xf32>
    %179 = arith.addf %178, %177 : vector<2x96xf32>
    %180 = arith.divf %178, %179 : vector<2x96xf32>
    %181 = vector.extract_strided_slice %174 {offsets = [0, 96], sizes = [2, 32], strides = [1, 1]} : vector<2x128xf32> to vector<2x32xf32>
    %182 = math.tanh %181 : vector<2x32xf32>
    %183 = vector.extract_strided_slice %180 {offsets = [0, 0], sizes = [2, 32], strides = [1, 1]} : vector<2x96xf32> to vector<2x32xf32>
    %184 = vector.extract_strided_slice %180 {offsets = [0, 32], sizes = [2, 32], strides = [1, 1]} : vector<2x96xf32> to vector<2x32xf32>
    %185 = vector.extract_strided_slice %180 {offsets = [0, 64], sizes = [2, 32], strides = [1, 1]} : vector<2x96xf32> to vector<2x32xf32>
    %186 = arith.mulf %184, %167 : vector<2x32xf32>
    %187 = arith.mulf %183, %182 : vector<2x32xf32>
    %188 = arith.addf %186, %187 : vector<2x32xf32>
    %189 = math.tanh %188 : vector<2x32xf32>
    %190 = arith.mulf %185, %189 : vector<2x32xf32>
    %c14 = arith.constant 14 : index
    %c0_45 = arith.constant 0 : index
    %191 = vector.load %arg12[%c14, %c0_45] : memref<16x32xf32, #tpu.memory_space<vmem>>, vector<2x32xf32>
    tpu.vector_store %arg12[%c14, %c0_45], %190 {strides = array<i32>} : memref<16x32xf32, #tpu.memory_space<vmem>>, vector<2x32xf32>,
    %c0_46 = arith.constant 0 : index
    %c0_47 = arith.constant 0 : index
    %c0_48 = arith.constant 0 : index
    %192 = vector.load %arg10[%c0_46, %c0_47, %c0_48] : memref<2x2x32xf32, #tpu.memory_space<vmem>>, vector<1x2x32xf32>
    %193 = vector.shape_cast %192 : vector<1x2x32xf32> to vector<2x32xf32>
    %194 = vector.shape_cast %190 : vector<2x32xf32> to vector<1x2x32xf32>
    tpu.vector_store %arg10[%c0_46, %c0_47, %c0_48], %194 {strides = array<i32>} : memref<2x2x32xf32, #tpu.memory_space<vmem>>, vector<1x2x32xf32>,
    %c0_49 = arith.constant 0 : index
    %c0_50 = arith.constant 0 : index
    %c0_51 = arith.constant 0 : index
    %195 = vector.load %arg11[%c0_49, %c0_50, %c0_51] : memref<2x2x32xf32, #tpu.memory_space<vmem>>, vector<1x2x32xf32>
    %196 = vector.shape_cast %195 : vector<1x2x32xf32> to vector<2x32xf32>
    %197 = vector.shape_cast %188 : vector<2x32xf32> to vector<1x2x32xf32>
    tpu.vector_store %arg11[%c0_49, %c0_50, %c0_51], %197 {strides = array<i32>} : memref<2x2x32xf32, #tpu.memory_space<vmem>>, vector<1x2x32xf32>,
    %c0_52 = arith.constant 0 : index
    %c0_53 = arith.constant 0 : index
    %198 = vector.load %arg12[%c0_52, %c0_53] : memref<16x32xf32, #tpu.memory_space<vmem>>, vector<16x32xf32>
    %199 = arith.truncf %198 : vector<16x32xf32> to vector<16x32xbf16>
    %c1 = arith.constant 1 : index
    %c0_54 = arith.constant 0 : index
    %c0_55 = arith.constant 0 : index
    %200 = vector.load %arg4[%c1, %c0_54, %c0_55] : memref<2x32x128xbf16, #tpu.memory_space<vmem>>, vector<1x32x128xbf16>
    %201 = vector.shape_cast %200 : vector<1x32x128xbf16> to vector<32x128xbf16>
    %c1_56 = arith.constant 1 : index
    %c0_57 = arith.constant 0 : index
    %c0_58 = arith.constant 0 : index
    %202 = vector.load %arg5[%c1_56, %c0_57, %c0_58] : memref<2x32x128xbf16, #tpu.memory_space<vmem>>, vector<1x32x128xbf16>
    %203 = vector.shape_cast %202 : vector<1x32x128xbf16> to vector<32x128xbf16>
    %c1_59 = arith.constant 1 : index
    %c0_60 = arith.constant 0 : index
    %c0_61 = arith.constant 0 : index
    %204 = vector.load %arg6[%c1_59, %c0_60, %c0_61] : memref<2x1x128xf32, #tpu.memory_space<vmem>>, vector<1x1x128xf32>
    %205 = vector.shape_cast %204 : vector<1x1x128xf32> to vector<1x128xf32>
    %cst_62 = arith.constant dense<0.000000e+00> : vector<16x128xf32>
    %206 = tpu.matmul %199, %201, %cst_62 {dimension_numbers = #tpu.dot_dimension_numbers<[1], [0], [0], [1], [0, 0, 1, 1], [], []>} : vector<16x32xbf16>, vector<32x128xbf16>, vector<16x128xf32> -> vector<16x128xf32>
    %207 = vector.broadcast %205 : vector<1x128xf32> to vector<16x128xf32>
    %208 = arith.addf %206, %207 : vector<16x128xf32>
    %c1_63 = arith.constant 1 : index
    %c0_64 = arith.constant 0 : index
    %c0_65 = arith.constant 0 : index
    %209 = vector.load %arg2[%c1_63, %c0_64, %c0_65] : memref<2x2x32xf32, #tpu.memory_space<vmem>>, vector<1x2x32xf32>
    %210 = vector.shape_cast %209 : vector<1x2x32xf32> to vector<2x32xf32>
    %c1_66 = arith.constant 1 : index
    %c0_67 = arith.constant 0 : index
    %c0_68 = arith.constant 0 : index
    %211 = vector.load %arg3[%c1_66, %c0_67, %c0_68] : memref<2x2x32xf32, #tpu.memory_space<vmem>>, vector<1x2x32xf32>
    %212 = vector.shape_cast %211 : vector<1x2x32xf32> to vector<2x32xf32>
    %213 = vector.extract_strided_slice %208 {offsets = [0, 0], sizes = [2, 128], strides = [1, 1]} : vector<16x128xf32> to vector<2x128xf32>
    %214 = arith.truncf %210 : vector<2x32xf32> to vector<2x32xbf16>
    %cst_69 = arith.constant dense<0.000000e+00> : vector<2x128xf32>
    %215 = tpu.matmul %214, %203, %cst_69 {dimension_numbers = #tpu.dot_dimension_numbers<[1], [0], [0], [1], [0, 0, 1, 1], [], []>} : vector<2x32xbf16>, vector<32x128xbf16>, vector<2x128xf32> -> vector<2x128xf32>
    %216 = arith.addf %213, %215 : vector<2x128xf32>
    %217 = vector.extract_strided_slice %216 {offsets = [0, 0], sizes = [2, 96], strides = [1, 1]} : vector<2x128xf32> to vector<2x96xf32>
    %218 = arith.negf %217 : vector<2x96xf32>
    %219 = math.exp %218 : vector<2x96xf32>
    %cst_70 = arith.constant 1.000000e+00 : f32
    %220 = vector.broadcast %cst_70 : f32 to vector<2x96xf32>
    %221 = arith.addf %220, %219 : vector<2x96xf32>
    %222 = arith.divf %220, %221 : vector<2x96xf32>
    %223 = vector.extract_strided_slice %216 {offsets = [0, 96], sizes = [2, 32], strides = [1, 1]} : vector<2x128xf32> to vector<2x32xf32>
    %224 = math.tanh %223 : vector<2x32xf32>
    %225 = vector.extract_strided_slice %222 {offsets = [0, 0], sizes = [2, 32], strides = [1, 1]} : vector<2x96xf32> to vector<2x32xf32>
    %226 = vector.extract_strided_slice %222 {offsets = [0, 32], sizes = [2, 32], strides = [1, 1]} : vector<2x96xf32> to vector<2x32xf32>
    %227 = vector.extract_strided_slice %222 {offsets = [0, 64], sizes = [2, 32], strides = [1, 1]} : vector<2x96xf32> to vector<2x32xf32>
    %228 = arith.mulf %226, %212 : vector<2x32xf32>
    %229 = arith.mulf %225, %224 : vector<2x32xf32>
    %230 = arith.addf %228, %229 : vector<2x32xf32>
    %231 = math.tanh %230 : vector<2x32xf32>
    %232 = arith.mulf %227, %231 : vector<2x32xf32>
    %c0_71 = arith.constant 0 : index
    %c0_72 = arith.constant 0 : index
    %233 = vector.load %arg12[%c0_71, %c0_72] : memref<16x32xf32, #tpu.memory_space<vmem>>, vector<2x32xf32>
    tpu.vector_store %arg12[%c0_71, %c0_72], %232 {strides = array<i32>} : memref<16x32xf32, #tpu.memory_space<vmem>>, vector<2x32xf32>,
    %234 = vector.extract_strided_slice %208 {offsets = [2, 0], sizes = [2, 128], strides = [1, 1]} : vector<16x128xf32> to vector<2x128xf32>
    %235 = arith.truncf %232 : vector<2x32xf32> to vector<2x32xbf16>
    %cst_73 = arith.constant dense<0.000000e+00> : vector<2x128xf32>
    %236 = tpu.matmul %235, %203, %cst_73 {dimension_numbers = #tpu.dot_dimension_numbers<[1], [0], [0], [1], [0, 0, 1, 1], [], []>} : vector<2x32xbf16>, vector<32x128xbf16>, vector<2x128xf32> -> vector<2x128xf32>
    %237 = arith.addf %234, %236 : vector<2x128xf32>
    %238 = vector.extract_strided_slice %237 {offsets = [0, 0], sizes = [2, 96], strides = [1, 1]} : vector<2x128xf32> to vector<2x96xf32>
    %239 = arith.negf %238 : vector<2x96xf32>
    %240 = math.exp %239 : vector<2x96xf32>
    %cst_74 = arith.constant 1.000000e+00 : f32
    %241 = vector.broadcast %cst_74 : f32 to vector<2x96xf32>
    %242 = arith.addf %241, %240 : vector<2x96xf32>
    %243 = arith.divf %241, %242 : vector<2x96xf32>
    %244 = vector.extract_strided_slice %237 {offsets = [0, 96], sizes = [2, 32], strides = [1, 1]} : vector<2x128xf32> to vector<2x32xf32>
    %245 = math.tanh %244 : vector<2x32xf32>
    %246 = vector.extract_strided_slice %243 {offsets = [0, 0], sizes = [2, 32], strides = [1, 1]} : vector<2x96xf32> to vector<2x32xf32>
    %247 = vector.extract_strided_slice %243 {offsets = [0, 32], sizes = [2, 32], strides = [1, 1]} : vector<2x96xf32> to vector<2x32xf32>
    %248 = vector.extract_strided_slice %243 {offsets = [0, 64], sizes = [2, 32], strides = [1, 1]} : vector<2x96xf32> to vector<2x32xf32>
    %249 = arith.mulf %247, %230 : vector<2x32xf32>
    %250 = arith.mulf %246, %245 : vector<2x32xf32>
    %251 = arith.addf %249, %250 : vector<2x32xf32>
    %252 = math.tanh %251 : vector<2x32xf32>
    %253 = arith.mulf %248, %252 : vector<2x32xf32>
    %c2_75 = arith.constant 2 : index
    %c0_76 = arith.constant 0 : index
    %254 = vector.load %arg12[%c2_75, %c0_76] : memref<16x32xf32, #tpu.memory_space<vmem>>, vector<2x32xf32>
    tpu.vector_store %arg12[%c2_75, %c0_76], %253 {strides = array<i32>} : memref<16x32xf32, #tpu.memory_space<vmem>>, vector<2x32xf32>,
    %255 = vector.extract_strided_slice %208 {offsets = [4, 0], sizes = [2, 128], strides = [1, 1]} : vector<16x128xf32> to vector<2x128xf32>
    %256 = arith.truncf %253 : vector<2x32xf32> to vector<2x32xbf16>
    %cst_77 = arith.constant dense<0.000000e+00> : vector<2x128xf32>
    %257 = tpu.matmul %256, %203, %cst_77 {dimension_numbers = #tpu.dot_dimension_numbers<[1], [0], [0], [1], [0, 0, 1, 1], [], []>} : vector<2x32xbf16>, vector<32x128xbf16>, vector<2x128xf32> -> vector<2x128xf32>
    %258 = arith.addf %255, %257 : vector<2x128xf32>
    %259 = vector.extract_strided_slice %258 {offsets = [0, 0], sizes = [2, 96], strides = [1, 1]} : vector<2x128xf32> to vector<2x96xf32>
    %260 = arith.negf %259 : vector<2x96xf32>
    %261 = math.exp %260 : vector<2x96xf32>
    %cst_78 = arith.constant 1.000000e+00 : f32
    %262 = vector.broadcast %cst_78 : f32 to vector<2x96xf32>
    %263 = arith.addf %262, %261 : vector<2x96xf32>
    %264 = arith.divf %262, %263 : vector<2x96xf32>
    %265 = vector.extract_strided_slice %258 {offsets = [0, 96], sizes = [2, 32], strides = [1, 1]} : vector<2x128xf32> to vector<2x32xf32>
    %266 = math.tanh %265 : vector<2x32xf32>
    %267 = vector.extract_strided_slice %264 {offsets = [0, 0], sizes = [2, 32], strides = [1, 1]} : vector<2x96xf32> to vector<2x32xf32>
    %268 = vector.extract_strided_slice %264 {offsets = [0, 32], sizes = [2, 32], strides = [1, 1]} : vector<2x96xf32> to vector<2x32xf32>
    %269 = vector.extract_strided_slice %264 {offsets = [0, 64], sizes = [2, 32], strides = [1, 1]} : vector<2x96xf32> to vector<2x32xf32>
    %270 = arith.mulf %268, %251 : vector<2x32xf32>
    %271 = arith.mulf %267, %266 : vector<2x32xf32>
    %272 = arith.addf %270, %271 : vector<2x32xf32>
    %273 = math.tanh %272 : vector<2x32xf32>
    %274 = arith.mulf %269, %273 : vector<2x32xf32>
    %c4_79 = arith.constant 4 : index
    %c0_80 = arith.constant 0 : index
    %275 = vector.load %arg12[%c4_79, %c0_80] : memref<16x32xf32, #tpu.memory_space<vmem>>, vector<2x32xf32>
    tpu.vector_store %arg12[%c4_79, %c0_80], %274 {strides = array<i32>} : memref<16x32xf32, #tpu.memory_space<vmem>>, vector<2x32xf32>,
    %276 = vector.extract_strided_slice %208 {offsets = [6, 0], sizes = [2, 128], strides = [1, 1]} : vector<16x128xf32> to vector<2x128xf32>
    %277 = arith.truncf %274 : vector<2x32xf32> to vector<2x32xbf16>
    %cst_81 = arith.constant dense<0.000000e+00> : vector<2x128xf32>
    %278 = tpu.matmul %277, %203, %cst_81 {dimension_numbers = #tpu.dot_dimension_numbers<[1], [0], [0], [1], [0, 0, 1, 1], [], []>} : vector<2x32xbf16>, vector<32x128xbf16>, vector<2x128xf32> -> vector<2x128xf32>
    %279 = arith.addf %276, %278 : vector<2x128xf32>
    %280 = vector.extract_strided_slice %279 {offsets = [0, 0], sizes = [2, 96], strides = [1, 1]} : vector<2x128xf32> to vector<2x96xf32>
    %281 = arith.negf %280 : vector<2x96xf32>
    %282 = math.exp %281 : vector<2x96xf32>
    %cst_82 = arith.constant 1.000000e+00 : f32
    %283 = vector.broadcast %cst_82 : f32 to vector<2x96xf32>
    %284 = arith.addf %283, %282 : vector<2x96xf32>
    %285 = arith.divf %283, %284 : vector<2x96xf32>
    %286 = vector.extract_strided_slice %279 {offsets = [0, 96], sizes = [2, 32], strides = [1, 1]} : vector<2x128xf32> to vector<2x32xf32>
    %287 = math.tanh %286 : vector<2x32xf32>
    %288 = vector.extract_strided_slice %285 {offsets = [0, 0], sizes = [2, 32], strides = [1, 1]} : vector<2x96xf32> to vector<2x32xf32>
    %289 = vector.extract_strided_slice %285 {offsets = [0, 32], sizes = [2, 32], strides = [1, 1]} : vector<2x96xf32> to vector<2x32xf32>
    %290 = vector.extract_strided_slice %285 {offsets = [0, 64], sizes = [2, 32], strides = [1, 1]} : vector<2x96xf32> to vector<2x32xf32>
    %291 = arith.mulf %289, %272 : vector<2x32xf32>
    %292 = arith.mulf %288, %287 : vector<2x32xf32>
    %293 = arith.addf %291, %292 : vector<2x32xf32>
    %294 = math.tanh %293 : vector<2x32xf32>
    %295 = arith.mulf %290, %294 : vector<2x32xf32>
    %c6_83 = arith.constant 6 : index
    %c0_84 = arith.constant 0 : index
    %296 = vector.load %arg12[%c6_83, %c0_84] : memref<16x32xf32, #tpu.memory_space<vmem>>, vector<2x32xf32>
    tpu.vector_store %arg12[%c6_83, %c0_84], %295 {strides = array<i32>} : memref<16x32xf32, #tpu.memory_space<vmem>>, vector<2x32xf32>,
    %297 = vector.extract_strided_slice %208 {offsets = [8, 0], sizes = [2, 128], strides = [1, 1]} : vector<16x128xf32> to vector<2x128xf32>
    %298 = arith.truncf %295 : vector<2x32xf32> to vector<2x32xbf16>
    %cst_85 = arith.constant dense<0.000000e+00> : vector<2x128xf32>
    %299 = tpu.matmul %298, %203, %cst_85 {dimension_numbers = #tpu.dot_dimension_numbers<[1], [0], [0], [1], [0, 0, 1, 1], [], []>} : vector<2x32xbf16>, vector<32x128xbf16>, vector<2x128xf32> -> vector<2x128xf32>
    %300 = arith.addf %297, %299 : vector<2x128xf32>
    %301 = vector.extract_strided_slice %300 {offsets = [0, 0], sizes = [2, 96], strides = [1, 1]} : vector<2x128xf32> to vector<2x96xf32>
    %302 = arith.negf %301 : vector<2x96xf32>
    %303 = math.exp %302 : vector<2x96xf32>
    %cst_86 = arith.constant 1.000000e+00 : f32
    %304 = vector.broadcast %cst_86 : f32 to vector<2x96xf32>
    %305 = arith.addf %304, %303 : vector<2x96xf32>
    %306 = arith.divf %304, %305 : vector<2x96xf32>
    %307 = vector.extract_strided_slice %300 {offsets = [0, 96], sizes = [2, 32], strides = [1, 1]} : vector<2x128xf32> to vector<2x32xf32>
    %308 = math.tanh %307 : vector<2x32xf32>
    %309 = vector.extract_strided_slice %306 {offsets = [0, 0], sizes = [2, 32], strides = [1, 1]} : vector<2x96xf32> to vector<2x32xf32>
    %310 = vector.extract_strided_slice %306 {offsets = [0, 32], sizes = [2, 32], strides = [1, 1]} : vector<2x96xf32> to vector<2x32xf32>
    %311 = vector.extract_strided_slice %306 {offsets = [0, 64], sizes = [2, 32], strides = [1, 1]} : vector<2x96xf32> to vector<2x32xf32>
    %312 = arith.mulf %310, %293 : vector<2x32xf32>
    %313 = arith.mulf %309, %308 : vector<2x32xf32>
    %314 = arith.addf %312, %313 : vector<2x32xf32>
    %315 = math.tanh %314 : vector<2x32xf32>
    %316 = arith.mulf %311, %315 : vector<2x32xf32>
    %c8_87 = arith.constant 8 : index
    %c0_88 = arith.constant 0 : index
    %317 = vector.load %arg12[%c8_87, %c0_88] : memref<16x32xf32, #tpu.memory_space<vmem>>, vector<2x32xf32>
    tpu.vector_store %arg12[%c8_87, %c0_88], %316 {strides = array<i32>} : memref<16x32xf32, #tpu.memory_space<vmem>>, vector<2x32xf32>,
    %318 = vector.extract_strided_slice %208 {offsets = [10, 0], sizes = [2, 128], strides = [1, 1]} : vector<16x128xf32> to vector<2x128xf32>
    %319 = arith.truncf %316 : vector<2x32xf32> to vector<2x32xbf16>
    %cst_89 = arith.constant dense<0.000000e+00> : vector<2x128xf32>
    %320 = tpu.matmul %319, %203, %cst_89 {dimension_numbers = #tpu.dot_dimension_numbers<[1], [0], [0], [1], [0, 0, 1, 1], [], []>} : vector<2x32xbf16>, vector<32x128xbf16>, vector<2x128xf32> -> vector<2x128xf32>
    %321 = arith.addf %318, %320 : vector<2x128xf32>
    %322 = vector.extract_strided_slice %321 {offsets = [0, 0], sizes = [2, 96], strides = [1, 1]} : vector<2x128xf32> to vector<2x96xf32>
    %323 = arith.negf %322 : vector<2x96xf32>
    %324 = math.exp %323 : vector<2x96xf32>
    %cst_90 = arith.constant 1.000000e+00 : f32
    %325 = vector.broadcast %cst_90 : f32 to vector<2x96xf32>
    %326 = arith.addf %325, %324 : vector<2x96xf32>
    %327 = arith.divf %325, %326 : vector<2x96xf32>
    %328 = vector.extract_strided_slice %321 {offsets = [0, 96], sizes = [2, 32], strides = [1, 1]} : vector<2x128xf32> to vector<2x32xf32>
    %329 = math.tanh %328 : vector<2x32xf32>
    %330 = vector.extract_strided_slice %327 {offsets = [0, 0], sizes = [2, 32], strides = [1, 1]} : vector<2x96xf32> to vector<2x32xf32>
    %331 = vector.extract_strided_slice %327 {offsets = [0, 32], sizes = [2, 32], strides = [1, 1]} : vector<2x96xf32> to vector<2x32xf32>
    %332 = vector.extract_strided_slice %327 {offsets = [0, 64], sizes = [2, 32], strides = [1, 1]} : vector<2x96xf32> to vector<2x32xf32>
    %333 = arith.mulf %331, %314 : vector<2x32xf32>
    %334 = arith.mulf %330, %329 : vector<2x32xf32>
    %335 = arith.addf %333, %334 : vector<2x32xf32>
    %336 = math.tanh %335 : vector<2x32xf32>
    %337 = arith.mulf %332, %336 : vector<2x32xf32>
    %c10_91 = arith.constant 10 : index
    %c0_92 = arith.constant 0 : index
    %338 = vector.load %arg12[%c10_91, %c0_92] : memref<16x32xf32, #tpu.memory_space<vmem>>, vector<2x32xf32>
    tpu.vector_store %arg12[%c10_91, %c0_92], %337 {strides = array<i32>} : memref<16x32xf32, #tpu.memory_space<vmem>>, vector<2x32xf32>,
    %339 = vector.extract_strided_slice %208 {offsets = [12, 0], sizes = [2, 128], strides = [1, 1]} : vector<16x128xf32> to vector<2x128xf32>
    %340 = arith.truncf %337 : vector<2x32xf32> to vector<2x32xbf16>
    %cst_93 = arith.constant dense<0.000000e+00> : vector<2x128xf32>
    %341 = tpu.matmul %340, %203, %cst_93 {dimension_numbers = #tpu.dot_dimension_numbers<[1], [0], [0], [1], [0, 0, 1, 1], [], []>} : vector<2x32xbf16>, vector<32x128xbf16>, vector<2x128xf32> -> vector<2x128xf32>
    %342 = arith.addf %339, %341 : vector<2x128xf32>
    %343 = vector.extract_strided_slice %342 {offsets = [0, 0], sizes = [2, 96], strides = [1, 1]} : vector<2x128xf32> to vector<2x96xf32>
    %344 = arith.negf %343 : vector<2x96xf32>
    %345 = math.exp %344 : vector<2x96xf32>
    %cst_94 = arith.constant 1.000000e+00 : f32
    %346 = vector.broadcast %cst_94 : f32 to vector<2x96xf32>
    %347 = arith.addf %346, %345 : vector<2x96xf32>
    %348 = arith.divf %346, %347 : vector<2x96xf32>
    %349 = vector.extract_strided_slice %342 {offsets = [0, 96], sizes = [2, 32], strides = [1, 1]} : vector<2x128xf32> to vector<2x32xf32>
    %350 = math.tanh %349 : vector<2x32xf32>
    %351 = vector.extract_strided_slice %348 {offsets = [0, 0], sizes = [2, 32], strides = [1, 1]} : vector<2x96xf32> to vector<2x32xf32>
    %352 = vector.extract_strided_slice %348 {offsets = [0, 32], sizes = [2, 32], strides = [1, 1]} : vector<2x96xf32> to vector<2x32xf32>
    %353 = vector.extract_strided_slice %348 {offsets = [0, 64], sizes = [2, 32], strides = [1, 1]} : vector<2x96xf32> to vector<2x32xf32>
    %354 = arith.mulf %352, %335 : vector<2x32xf32>
    %355 = arith.mulf %351, %350 : vector<2x32xf32>
    %356 = arith.addf %354, %355 : vector<2x32xf32>
    %357 = math.tanh %356 : vector<2x32xf32>
    %358 = arith.mulf %353, %357 : vector<2x32xf32>
    %c12_95 = arith.constant 12 : index
    %c0_96 = arith.constant 0 : index
    %359 = vector.load %arg12[%c12_95, %c0_96] : memref<16x32xf32, #tpu.memory_space<vmem>>, vector<2x32xf32>
    tpu.vector_store %arg12[%c12_95, %c0_96], %358 {strides = array<i32>} : memref<16x32xf32, #tpu.memory_space<vmem>>, vector<2x32xf32>,
    %360 = vector.extract_strided_slice %208 {offsets = [14, 0], sizes = [2, 128], strides = [1, 1]} : vector<16x128xf32> to vector<2x128xf32>
    %361 = arith.truncf %358 : vector<2x32xf32> to vector<2x32xbf16>
    %cst_97 = arith.constant dense<0.000000e+00> : vector<2x128xf32>
    %362 = tpu.matmul %361, %203, %cst_97 {dimension_numbers = #tpu.dot_dimension_numbers<[1], [0], [0], [1], [0, 0, 1, 1], [], []>} : vector<2x32xbf16>, vector<32x128xbf16>, vector<2x128xf32> -> vector<2x128xf32>
    %363 = arith.addf %360, %362 : vector<2x128xf32>
    %364 = vector.extract_strided_slice %363 {offsets = [0, 0], sizes = [2, 96], strides = [1, 1]} : vector<2x128xf32> to vector<2x96xf32>
    %365 = arith.negf %364 : vector<2x96xf32>
    %366 = math.exp %365 : vector<2x96xf32>
    %cst_98 = arith.constant 1.000000e+00 : f32
    %367 = vector.broadcast %cst_98 : f32 to vector<2x96xf32>
    %368 = arith.addf %367, %366 : vector<2x96xf32>
    %369 = arith.divf %367, %368 : vector<2x96xf32>
    %370 = vector.extract_strided_slice %363 {offsets = [0, 96], sizes = [2, 32], strides = [1, 1]} : vector<2x128xf32> to vector<2x32xf32>
    %371 = math.tanh %370 : vector<2x32xf32>
    %372 = vector.extract_strided_slice %369 {offsets = [0, 0], sizes = [2, 32], strides = [1, 1]} : vector<2x96xf32> to vector<2x32xf32>
    %373 = vector.extract_strided_slice %369 {offsets = [0, 32], sizes = [2, 32], strides = [1, 1]} : vector<2x96xf32> to vector<2x32xf32>
    %374 = vector.extract_strided_slice %369 {offsets = [0, 64], sizes = [2, 32], strides = [1, 1]} : vector<2x96xf32> to vector<2x32xf32>
    %375 = arith.mulf %373, %356 : vector<2x32xf32>
    %376 = arith.mulf %372, %371 : vector<2x32xf32>
    %377 = arith.addf %375, %376 : vector<2x32xf32>
    %378 = math.tanh %377 : vector<2x32xf32>
    %379 = arith.mulf %374, %378 : vector<2x32xf32>
    %c14_99 = arith.constant 14 : index
    %c0_100 = arith.constant 0 : index
    %380 = vector.load %arg12[%c14_99, %c0_100] : memref<16x32xf32, #tpu.memory_space<vmem>>, vector<2x32xf32>
    tpu.vector_store %arg12[%c14_99, %c0_100], %379 {strides = array<i32>} : memref<16x32xf32, #tpu.memory_space<vmem>>, vector<2x32xf32>,
    %c1_101 = arith.constant 1 : index
    %c0_102 = arith.constant 0 : index
    %c0_103 = arith.constant 0 : index
    %381 = vector.load %arg10[%c1_101, %c0_102, %c0_103] : memref<2x2x32xf32, #tpu.memory_space<vmem>>, vector<1x2x32xf32>
    %382 = vector.shape_cast %381 : vector<1x2x32xf32> to vector<2x32xf32>
    %383 = vector.shape_cast %379 : vector<2x32xf32> to vector<1x2x32xf32>
    tpu.vector_store %arg10[%c1_101, %c0_102, %c0_103], %383 {strides = array<i32>} : memref<2x2x32xf32, #tpu.memory_space<vmem>>, vector<1x2x32xf32>,
    %c1_104 = arith.constant 1 : index
    %c0_105 = arith.constant 0 : index
    %c0_106 = arith.constant 0 : index
    %384 = vector.load %arg11[%c1_104, %c0_105, %c0_106] : memref<2x2x32xf32, #tpu.memory_space<vmem>>, vector<1x2x32xf32>
    %385 = vector.shape_cast %384 : vector<1x2x32xf32> to vector<2x32xf32>
    %386 = vector.shape_cast %377 : vector<2x32xf32> to vector<1x2x32xf32>
    tpu.vector_store %arg11[%c1_104, %c0_105, %c0_106], %386 {strides = array<i32>} : memref<2x2x32xf32, #tpu.memory_space<vmem>>, vector<1x2x32xf32>,
    %c0_107 = arith.constant 0 : index
    %c0_108 = arith.constant 0 : index
    %387 = vector.load %arg12[%c0_107, %c0_108] : memref<16x32xf32, #tpu.memory_space<vmem>>, vector<16x32xf32>
    %388 = arith.truncf %387 : vector<16x32xf32> to vector<16x32xbf16>
    %c0_109 = arith.constant 0 : index
    %c0_110 = arith.constant 0 : index
    %389 = vector.load %arg7[%c0_109, %c0_110] : memref<32x16xbf16, #tpu.memory_space<vmem>>, vector<32x16xbf16>
    %cst_111 = arith.constant dense<0.000000e+00> : vector<16x16xf32>
    %390 = tpu.matmul %388, %389, %cst_111 {dimension_numbers = #tpu.dot_dimension_numbers<[1], [0], [0], [1], [0, 0, 1, 1], [], []>} : vector<16x32xbf16>, vector<32x16xbf16>, vector<16x16xf32> -> vector<16x16xf32>
    %c0_112 = arith.constant 0 : index
    %c0_113 = arith.constant 0 : index
    %391 = vector.load %arg8[%c0_112, %c0_113] : memref<1x16xf32, #tpu.memory_space<vmem>>, vector<1x16xf32>
    %392 = vector.broadcast %391 : vector<1x16xf32> to vector<16x16xf32>
    %393 = arith.addf %390, %392 : vector<16x16xf32>
    %c0_114 = arith.constant 0 : index
    %c0_115 = arith.constant 0 : index
    %394 = vector.load %arg9[%c0_114, %c0_115] : memref<16x16xf32, #tpu.memory_space<vmem>>, vector<16x16xf32>
    tpu.vector_store %arg9[%c0_114, %c0_115], %393 {strides = array<i32>} : memref<16x16xf32, #tpu.memory_space<vmem>>, vector<16x16xf32>,
    return
  }
}

</mosaic_0001>

<bundles_post_ra>
// kernel: lstm_forward.1
= control target key start
LH: loop header
LB: loop body
LE: loop exit
PB: predicated region body
PF: predicated region fallthrough
CT: control target
= control target key end

     0   :  { %17 = vsyncpa [#allocation4], 0  ;;  %s2854_s0 = inlined_call_operand.vmem [shape: s32[16,1], index: 0, kind: input, shape index: {}]   ;;  %s2855_s1 = inlined_call_operand.hbm [shape: bf16[16,32], index: 1, kind: input, shape index: {}]   ;;  %s2856_s2 = inlined_call_operand.vmem [shape: f32[2,2,32], index: 2, kind: input, shape index: {}]   ;;  %s2857_s3 = inlined_call_operand.vmem [shape: f32[2,2,32], index: 3, kind: input, shape index: {}]   ;;  %s2858_s4 = inlined_call_operand.vmem [shape: bf16[2,32,128], index: 4, kind: input, shape index: {}]   ;;  %s2859_s5 = inlined_call_operand.vmem [shape: bf16[2,32,128], index: 5, kind: input, shape index: {}]   ;;  %s2860_s6 = inlined_call_operand.hbm [shape: f32[2,1,128], index: 6, kind: input, shape index: {}]   ;;  %s2861_s7 = inlined_call_operand.vmem [shape: bf16[32,16], index: 7, kind: input, shape index: {}]   ;;  %s2862_s8 = inlined_call_operand.vmem [shape: f32[1,16], index: 8, kind: input, shape index: {}]   ;;  %s2863_s9 = inlined_call_operand.hbm [shape: f32[16,16], index: 9, kind: output, shape index: {0}]   ;;  %s2864_s10 = inlined_call_operand.hbm [shape: f32[2,2,32], index: 10, kind: output, shape index: {1}]   ;;  %s2865_s11 = inlined_call_operand.hbm [shape: f32[2,2,32], index: 11, kind: output, shape index: {2}]  }
   0x1   :  { %18 = vsyncpa [#allocation7], 0 }
   0x2   :  { %19 = vsyncpa [#allocation5], 0 }
   0x3   :  { %20 = vsyncpa [#allocation10], 0  ;;  %s2327_s17 = smov [#allocation3]   ;;  %s2209_s21 = scalar_lea.hbm %s2855_s1, 128 }
   0x4   :  { %s28_s18 = sshll.u32 %s2327_s17, 4  ;;  %p2210_p0 = scmp.ne.s32.totalorder %s2855_s1, %s2209_s21  ;;  %s29_s18 = int_to_ptr.vmem [resolvable:$true] %s28_s18 }
   0x5   :  { %p2213_p1 = scmp.lt.u32.totalorder %s2209_s21, %s2855_s1 }
   0x7   :  { %p2215_p2 = pnand %p2213_p1, %p2210_p0 }
   0x9   :  { %2218 = shalt.err (!%p2215_p2)
}
   0xa   :  { %s2219_s26 = scalar_lea.vmem %s29_s18, 128  ;;  %p2224_p4 = scmp.lt.s32.totalorder %s29_s18, %s29_s18 }
   0xb   :  { %p2220_p3 = scmp.ne.s32.totalorder %s29_s18, %s2219_s26  ;;  %p2225_p5 = scmp.lt.s32.totalorder %s2219_s26, %s2219_s26 }
   0xd   :  { %p2226_p6 = por %p2225_p5, %p2224_p4 }
   0xf   :  { %p2227_p7 = pnand %p2226_p6, %p2220_p3 }
  0x11   :  { %2230 = shalt.err (!%p2227_p7)
}
  0x12   :  { %s2328_s27 = smov 64   ;;  %s2329_s28 = smov 4  }
  0x13   :  { %34 = dma.hbm_to_vmem [thread:$0]  %s2855_s1, 128, %s29_s18, [#allocation4], %s2328_s27, %s2328_s27, %s2329_s28  }
  0x14   :  { %s2330_s12 = smov [#allocation6]   ;;  %s2231_s16 = scalar_lea.hbm %s2860_s6, 32 }
  0x15   :  { %s48_s13 = sshll.u32 %s2330_s12, 4  ;;  %p2232_p8 = scmp.ne.s32.totalorder %s2860_s6, %s2231_s16  ;;  %s49_s13 = int_to_ptr.vmem [resolvable:$true] %s48_s13 }
  0x16   :  { %p2235_p9 = scmp.lt.u32.totalorder %s2231_s16, %s2860_s6 }
  0x18   :  { %p2237_p10 = pnand %p2235_p9, %p2232_p8 }
  0x1a   :  { %2240 = shalt.err (!%p2237_p10)
}
  0x1b   :  { %s2241_s22 = scalar_lea.vmem %s49_s13, 32  ;;  %p2246_p12 = scmp.lt.s32.totalorder %s49_s13, %s49_s13 }
  0x1c   :  { %p2242_p11 = scmp.ne.s32.totalorder %s49_s13, %s2241_s22  ;;  %p2247_p13 = scmp.lt.s32.totalorder %s2241_s22, %s2241_s22 }
  0x1e   :  { %p2248_p0 = por %p2247_p13, %p2246_p12 }
  0x20   :  { %p2249_p1 = pnand %p2248_p0, %p2242_p11 }
  0x22   :  { %2252 = shalt.err (!%p2249_p1)
}
  0x23   :  { %s2331_s1 = smov 16   ;;  %s2332_s18 = smov 1  }
  0x24   :  { %54 = dma.hbm_to_vmem [thread:$0]  %s2860_s6, 32, %s49_s13, [#allocation7], %s2331_s1, %s2331_s1, %s2332_s18  }
  0x25   :  { %2319 = dma.done.wait [#allocation4], 128  }
  0x26   :  { %2320 = vsyncadd [#allocation4], 4294967168 }
  0x27   :  { %2321 = dma.done.wait [#allocation7], 32  }
  0x28   :  { %2322 = vsyncadd [#allocation7], 4294967264  ;;  %v2333_v0 = vmov 0   ;;  %v2334_v1 = vmov 0.0   ;;  %v66_v2 = vld [vmem:[%s2854_s0] sm:$0xff]  ;;  %v67_v3 = vld [vmem:[%s2854_s0 + $0x8] sm:$0xff]  ;;  %v68_v6 = vlaneseq }
  0x29   :  { %2069 = vset.pattern.permute.xlu0 %v2333_v0  ;;  %1894 = vmatprep.subr.bf16.mxu0 %v2334_v1  ;;  %v2070_v4 = vld [vmem:[#allocation3] sm:$0xff]   ;;  %vm2335_vm0 = vmmov 0   ;;  %v2072_v5 = vld [vmem:[%s2858_s4] sm:$0xff]   ;;  %vm89_vm3 = vcmask 130048   ;;  %v2462_v14 = vld [vmem:[%s2859_s5 + $0x8] sm:$0xff]   ;;  %vm162_vm4 = vcmask 261120  }
  0x2a   :  { %1900 = vmatprep.subr.bf16.mxu1 %v2334_v1  ;;  %71 = vperm.xlu0 %2069, %v66_v2   ;;  %v69_v7 = vand.u32 127, %v68_v6  ;;  %v2452_v12 = vld [vmem:[%s2859_s5] sm:$0xff]   ;;  %v2074_v15 = vld [vmem:[%s2858_s4 + $0x8] sm:$0xff]   ;;  %v1777_v27 = vld [vmem:[#allocation6] ss:$0 sm:$0xff]  ;;  %s2336_s20 = smov 32  }
  0x2b   :  { %1895 = vmatpush3.bf16.msra.mxu0 %v2070_v4  ;;  %1896 = vmatprep.mubr.msk.bf16.mxu0 %vm2335_vm0, %v2334_v1  ;;  %v207_v16 = vld [vmem:[%s2856_s2] sm:$0x3]  ;;  %vm298_vm5 = vcmask 254976   ;;  %vm467_vm6 = vcmask 259076   ;;  %vm382_vm7 = vcmask 257026   ;;  %vm552_vm8 = vcmask 261126  }
  0x2c   :  { %1908 = vmatprep.subr.bf16.mxu0 %v2334_v1  ;;  %1904 = vmatprep.mubr.msk.bf16.mxu1 %vm2335_vm0, %v2334_v1  ;;  %v209_v17 = vpack.c.bf16 %v207_v16, %v207_v16  ;;  %v208_v36 = vld [vmem:[%s2857_s3] sm:$0x3] }
  0x2d   :  { %1901 = vmatpush3.bf16.msra.mxu1 %v2072_v5 }
  0x2e   :  { %74 = vperm.xlu0 %2069, %v67_v3   ;;  %1902 = vmatprep.subr.bf16.mxu1 %v2334_v1 }
  0x31   :  { %1903 = vmatpush3.bf16.msra.mxu1 %v2074_v15 }
  0x32   :  { %1916 = vmatprep.subr.bf16.mxu1 %v2334_v1 }
  0xa9   :  { %v72_v8 = vpop.permute.xlu0 %71 }
  0xaa   :  { %vm76_vm1 = vcmp.eq.s32.totalorder %v69_v7, %v72_v8 }
  0xab   :  { %v78_v10 = vsel %vm76_vm1, 1.0, %v2334_v1 }
  0xad   :  { %v75_v9 = vpop.permute.xlu0 %74 }
  0xae   :  { %vm77_vm2 = vcmp.eq.s32.totalorder %v69_v7, %v75_v9 }
  0xaf   :  { %v79_v11 = vsel %vm77_vm2, 1.0, %v2334_v1 }
  0xb0   :  { %v80_v13 = vpack.c.bf16 %v79_v11, %v78_v10 }
  0xb2   :  { %1897 = vmatmul.mubr.msk.bf16.vlgmr.msra.gmra.mrb[0].mxu0 %vm89_vm3, %v80_v13 }
  0xb3   :  { %1909 = vmatpush3.bf16.msra.mxu0 %v2452_v12  ;;  %1912 = vmatprep.mubr.msk.bf16.mxu0 %vm2335_vm0, %v2334_v1 }
  0xb4   :  { %1910 = vmatprep.subr.bf16.mxu0 %v2334_v1 }
  0xb7   :  { %1911 = vmatpush3.bf16.msra.mxu0 %v2462_v14 }
  0xb8   :  { %1924 = vmatprep.subr.bf16.mxu0 %v2334_v1 }
  0xba   :  { %1913 = vmatmul.mubr.msk.bf16.vlgmr.msra.gmra.mrb[4].mxu0 %vm162_vm4, %v209_v17 }
  0xbb   :  { %1925 = vmatpush3.bf16.msra.mxu0 %v2452_v12  ;;  %1928 = vmatprep.mubr.msk.bf16.mxu0 %vm2335_vm0, %v2334_v1 }
  0xbc   :  { %1926 = vmatprep.subr.bf16.mxu0 %v2334_v1 }
  0xbf   :  { %1927 = vmatpush3.bf16.msra.mxu0 %v2462_v14 }
  0xc0   :  { %1940 = vmatprep.subr.bf16.mxu0 %v2334_v1 }
 0x185   :  { %v127_v18 = vpop.f32.mrb[0].mxu0 }
 0x186   :  { %v1898_v19 = vpop.f32.mrb[1].mxu0 }
 0x187   :  { %v130_v20 = vpop.f32.mrb[2].mxu0 }
 0x188   :  { %v134_v21 = vpack.c.bf16 %v130_v20, %v127_v18  ;;  %v1899_v22 = vpop.f32.mrb[3].mxu0 }
 0x18a   :  { %1905 = vmatmul.mubr.msk.bf16.vlgmr.msra.gmra.mrb[0].mxu1 %vm162_vm4, %v134_v21 }
 0x18b   :  { %1917 = vmatpush3.bf16.msra.mxu1 %v2452_v12  ;;  %1920 = vmatprep.mubr.msk.bf16.mxu1 %vm2335_vm0, %v2334_v1 }
 0x18c   :  { %1918 = vmatprep.subr.bf16.mxu1 %v2334_v1 }
 0x18d   :  { %v259_v23 = vpop.f32.mrb[4].mxu0 }
 0x18e   :  { %v1914_v24 = vpop.f32.mrb[5].mxu0 }
 0x18f   :  { %1919 = vmatpush3.bf16.msra.mxu1 %v2462_v14  ;;  %v262_v25 = vpop.f32.mrb[6].mxu0 }
 0x190   :  { %1932 = vmatprep.subr.bf16.mxu1 %v2334_v1  ;;  %v1915_v26 = vpop.f32.mrb[7].mxu0 }
 0x25d   :  { %v200_v28 = vpop.f32.mrb[0].mxu1 }
 0x25e   :  { %v2487_v29 = vadd.f32 %v1777_v27, %v200_v28  ;;  %v1906_v30 = vpop.f32.mrb[1].mxu1 }
 0x25f   :  { %v203_v31 = vpop.f32.mrb[2].mxu1 }
 0x260   :  { %v265_v32 = vadd.f32 %v259_v23, %v2487_v29  ;;  %v2490_v33 = vadd.f32 %v1777_v27, %v203_v31  ;;  %v1907_v34 = vpop.f32.mrb[3].mxu1 }
 0x262   :  { %2081 = vtanh.f32 %v265_v32  ;;  %v1784_v37 = vmul.f32 -1.442695, %v265_v32 }
 0x264   :  { %2083 = vpow2.f32 %v1784_v37 }
 0x26c   :  { %v2082_v35 = vpop.eup %2081 }
 0x26d   :  { %279 = vrot.lane.b32.xlu1 %v2082_v35, %s2336_s20 }
 0x26e   :  { %v2084_v38 = vpop.eup %2083 }
 0x26f   :  { %v269_v39 = vadd.f32 1.0, %v2084_v38 }
 0x271   :  { %274 = vrot.lane.b32.xlu1 %v208_v36, %s2336_s20  ;;  %2085 = vrcp.f32 %v269_v39 }
 0x27b   :  { %v2086_v40 = vpop.eup %2085 }
 0x2df   :  { %v280_v41 = vpop.permute.xlu1 %279 }
 0x2e0   :  { %v282_v42 = vmul.f32 %v2086_v40, %v280_v41 }
 0x2e2   :  { %284 = vrot.lane.b32.xlu0 %v282_v42, %s2336_s20 }
 0x2e3   :  { %v275_v43 = vpop.permute.xlu1 %274 }
 0x2e4   :  { %v277_v44 = vmul.f32 %v2086_v40, %v275_v43 }
 0x354   :  { %v285_v45 = vpop.permute.xlu0 %284 }
 0x355   :  { %v287_v46 = vadd.f32 %v285_v45, %v277_v44 }
 0x357   :  { %2087 = vtanh.f32 %v287_v46  ;;  %v359_v2 = vrot.slane %v287_v46, 6 }
 0x361   :  { %v2088_v47 = vpop.eup %2087 }
 0x362   :  { %290 = vrot.lane.b32.xlu1 %v2088_v47, %s2336_s20 }
 0x3d4   :  { %v291_v48 = vpop.permute.xlu1 %290 }
 0x3d5   :  { %v2499_v49 = vmul.f32 %v2086_v40, %v291_v48 }
 0x3d7   :  { %v300_v50 = vpack.c.bf16 %v2499_v49, %v2499_v49 }
 0x3d9   :  { %302 = vrot.lane.b32.xlu0 %v300_v50, %s2328_s27 }
 0x44b   :  { %v303_v51 = vpop.permute.xlu0 %302 }
 0x44c   :  { %1921 = vmatmul.mubr.msk.bf16.vlgmr.msra.gmra.mrb[4].mxu1 %vm162_vm4, %v303_v51 }
 0x44d   :  { %1933 = vmatpush3.bf16.msra.mxu1 %v2452_v12  ;;  %1936 = vmatprep.mubr.msk.bf16.mxu1 %vm2335_vm0, %v2334_v1 }
 0x44e   :  { %1934 = vmatprep.subr.bf16.mxu1 %v2334_v1 }
 0x451   :  { %1935 = vmatpush3.bf16.msra.mxu1 %v2462_v14 }
 0x452   :  { %1948 = vmatprep.subr.bf16.mxu1 %v2334_v1 }
 0x51f   :  { %v341_v52 = vpop.f32.mrb[4].mxu1 }
 0x520   :  { %v348_v53 = vrot.slane %v341_v52, 6  ;;  %v1922_v54 = vpop.f32.mrb[5].mxu1 }
 0x521   :  { %v344_v55 = vpop.f32.mrb[6].mxu1 }
 0x522   :  { %v350_v56 = vadd.f32 %v348_v53, %v2487_v29  ;;  %v1923_v57 = vpop.f32.mrb[7].mxu1 }
 0x524   :  { %2089 = vtanh.f32 %v350_v56  ;;  %v1786_v59 = vmul.f32 -1.442695, %v350_v56 }
 0x526   :  { %2091 = vpow2.f32 %v1786_v59 }
 0x52e   :  { %v2090_v58 = vpop.eup %2089 }
 0x52f   :  { %363 = vrot.lane.b32.xlu1 %v2090_v58, %s2336_s20 }
 0x530   :  { %v2092_v60 = vpop.eup %2091 }
 0x531   :  { %v354_v61 = vadd.f32 1.0, %v2092_v60 }
 0x533   :  { %2093 = vrcp.f32 %v354_v61 }
 0x53d   :  { %v2094_v62 = vpop.eup %2093 }
 0x53e   :  { %v361_v3 = vmul.f32 %v2094_v62, %v359_v2 }
 0x5a1   :  { %v364_v63 = vpop.permute.xlu1 %363 }
 0x5a2   :  { %v366_v0 = vmul.f32 %v2094_v62, %v364_v63 }
 0x5a4   :  { %368 = vrot.lane.b32.xlu0 %v366_v0, %s2336_s20 }
 0x616   :  { %v369_v4 = vpop.permute.xlu0 %368 }
 0x617   :  { %v371_v5 = vadd.f32 %v369_v4, %v361_v3 }
 0x619   :  { %2095 = vtanh.f32 %v371_v5  ;;  %v444_v27 = vrot.slane %v371_v5, 6 }
 0x623   :  { %v2096_v6 = vpop.eup %2095 }
 0x624   :  { %374 = vrot.lane.b32.xlu1 %v2096_v6, %s2336_s20 }
 0x696   :  { %v375_v7 = vpop.permute.xlu1 %374 }
 0x697   :  { %v2515_v8 = vmul.f32 %v2094_v62, %v375_v7 }
 0x699   :  { %v384_v9 = vpack.c.bf16 %v2515_v8, %v2515_v8 }
 0x69b   :  { %v386_v10 = vrot.slane %v384_v9, 1 }
 0x69d   :  { %387 = vrot.lane.b32.xlu0 %v386_v10, %s2328_s27 }
 0x70f   :  { %v388_v11 = vpop.permute.xlu0 %387 }
 0x710   :  { %1929 = vmatmul.mubr.msk.bf16.vlgmr.msra.gmra.mrb[8].mxu0 %vm162_vm4, %v388_v11 }
 0x711   :  { %1941 = vmatpush3.bf16.msra.mxu0 %v2452_v12  ;;  %1944 = vmatprep.mubr.msk.bf16.mxu0 %vm2335_vm0, %v2334_v1 }
 0x712   :  { %1942 = vmatprep.subr.bf16.mxu0 %v2334_v1 }
 0x715   :  { %1943 = vmatpush3.bf16.msra.mxu0 %v2462_v14 }
 0x716   :  { %1956 = vmatprep.subr.bf16.mxu0 %v2334_v1 }
 0x7e3   :  { %v426_v13 = vpop.f32.mrb[8].mxu0 }
 0x7e4   :  { %v433_v15 = vrot.slane %v426_v13, 4  ;;  %v1930_v16 = vpop.f32.mrb[9].mxu0 }
 0x7e5   :  { %v429_v17 = vpop.f32.mrb[10].mxu0 }
 0x7e6   :  { %v435_v18 = vadd.f32 %v433_v15, %v2487_v29  ;;  %v1931_v19 = vpop.f32.mrb[11].mxu0 }
 0x7e8   :  { %2097 = vtanh.f32 %v435_v18  ;;  %v1788_v21 = vmul.f32 -1.442695, %v435_v18 }
 0x7ea   :  { %2099 = vpow2.f32 %v1788_v21 }
 0x7f2   :  { %v2098_v20 = vpop.eup %2097 }
 0x7f3   :  { %448 = vrot.lane.b32.xlu1 %v2098_v20, %s2336_s20 }
 0x7f4   :  { %v2100_v22 = vpop.eup %2099 }
 0x7f5   :  { %v439_v23 = vadd.f32 1.0, %v2100_v22 }
 0x7f7   :  { %2101 = vrcp.f32 %v439_v23 }
 0x801   :  { %v2102_v24 = vpop.eup %2101 }
 0x802   :  { %v446_v28 = vmul.f32 %v2102_v24, %v444_v27 }
 0x865   :  { %v449_v25 = vpop.permute.xlu1 %448 }
 0x866   :  { %v451_v26 = vmul.f32 %v2102_v24, %v449_v25 }
 0x868   :  { %453 = vrot.lane.b32.xlu0 %v451_v26, %s2336_s20 }
 0x8da   :  { %v454_v30 = vpop.permute.xlu0 %453 }
 0x8db   :  { %v456_v31 = vadd.f32 %v454_v30, %v446_v28 }
 0x8dd   :  { %2103 = vtanh.f32 %v456_v31  ;;  %v529_v53 = vrot.slane %v456_v31, 6 }
 0x8e7   :  { %v2104_v32 = vpop.eup %2103 }
 0x8e8   :  { %459 = vrot.lane.b32.xlu1 %v2104_v32, %s2336_s20 }
 0x95a   :  { %v460_v34 = vpop.permute.xlu1 %459 }
 0x95b   :  { %v2531_v35 = vmul.f32 %v2102_v24, %v460_v34 }
 0x95d   :  { %v469_v36 = vpack.c.bf16 %v2531_v35, %v2531_v35 }
 0x95f   :  { %v471_v37 = vrot.slane %v469_v36, 2 }
 0x961   :  { %472 = vrot.lane.b32.xlu0 %v471_v37, %s2328_s27 }
 0x9d3   :  { %v473_v38 = vpop.permute.xlu0 %472 }
 0x9d4   :  { %1937 = vmatmul.mubr.msk.bf16.vlgmr.msra.gmra.mrb[8].mxu1 %vm162_vm4, %v473_v38 }
 0x9d5   :  { %1949 = vmatpush3.bf16.msra.mxu1 %v2452_v12  ;;  %1952 = vmatprep.mubr.msk.bf16.mxu1 %vm2335_vm0, %v2334_v1 }
 0x9d6   :  { %1950 = vmatprep.subr.bf16.mxu1 %v2334_v1 }
 0x9d9   :  { %1951 = vmatpush3.bf16.msra.mxu1 %v2462_v14 }
 0x9da   :  { %1964 = vmatprep.subr.bf16.mxu1 %v2334_v1 }
 0xaa7   :  { %v511_v39 = vpop.f32.mrb[8].mxu1 }
 0xaa8   :  { %v518_v40 = vrot.slane %v511_v39, 2  ;;  %v1938_v41 = vpop.f32.mrb[9].mxu1 }
 0xaa9   :  { %v514_v42 = vpop.f32.mrb[10].mxu1 }
 0xaaa   :  { %v520_v43 = vadd.f32 %v518_v40, %v2487_v29  ;;  %v1939_v44 = vpop.f32.mrb[11].mxu1 }
 0xaac   :  { %2105 = vtanh.f32 %v520_v43  ;;  %v1790_v46 = vmul.f32 -1.442695, %v520_v43 }
 0xaae   :  { %2107 = vpow2.f32 %v1790_v46 }
 0xab6   :  { %v2106_v45 = vpop.eup %2105 }
 0xab7   :  { %533 = vrot.lane.b32.xlu1 %v2106_v45, %s2336_s20 }
 0xab8   :  { %v2108_v47 = vpop.eup %2107 }
 0xab9   :  { %v524_v48 = vadd.f32 1.0, %v2108_v47 }
 0xabb   :  { %2109 = vrcp.f32 %v524_v48 }
 0xac5   :  { %v2110_v50 = vpop.eup %2109 }
 0xac6   :  { %v531_v54 = vmul.f32 %v2110_v50, %v529_v53 }
 0xb29   :  { %v534_v51 = vpop.permute.xlu1 %533 }
 0xb2a   :  { %v536_v52 = vmul.f32 %v2110_v50, %v534_v51 }
 0xb2c   :  { %538 = vrot.lane.b32.xlu0 %v536_v52, %s2336_s20 }
 0xb9e   :  { %v539_v55 = vpop.permute.xlu0 %538 }
 0xb9f   :  { %v541_v56 = vadd.f32 %v539_v55, %v531_v54 }
 0xba1   :  { %2111 = vtanh.f32 %v541_v56  ;;  %v611_v13 = vrot.slane %v541_v56, 6 }
 0xbab   :  { %v2112_v29 = vpop.eup %2111 }
 0xbac   :  { %544 = vrot.lane.b32.xlu1 %v2112_v29, %s2336_s20 }
 0xc1e   :  { %v545_v57 = vpop.permute.xlu1 %544 }
 0xc1f   :  { %v2547_v58 = vmul.f32 %v2110_v50, %v545_v57 }
 0xc21   :  { %v554_v59 = vpack.c.bf16 %v2547_v58, %v2547_v58 }
 0xc23   :  { %v556_v60 = vrot.slane %v554_v59, 3 }
 0xc25   :  { %557 = vrot.lane.b32.xlu0 %v556_v60, %s2328_s27 }
 0xc97   :  { %v558_v61 = vpop.permute.xlu0 %557 }
 0xc98   :  { %1945 = vmatmul.mubr.msk.bf16.vlgmr.msra.gmra.mrb[12].mxu0 %vm162_vm4, %v558_v61 }
 0xc99   :  { %1957 = vmatpush3.bf16.msra.mxu0 %v2452_v12  ;;  %1960 = vmatprep.mubr.msk.bf16.mxu0 %vm2335_vm0, %v2334_v1 }
 0xc9a   :  { %1958 = vmatprep.subr.bf16.mxu0 %v2334_v1 }
 0xc9d   :  { %1959 = vmatpush3.bf16.msra.mxu0 %v2462_v14 }
 0xc9e   :  { %1972 = vmatprep.subr.bf16.mxu0 %v2334_v1 }
 0xd6b   :  { %v596_v62 = vpop.f32.mrb[12].mxu0 }
 0xd6c   :  { %v602_v63 = vadd.f32 %v596_v62, %v2490_v33  ;;  %v1946_v0 = vpop.f32.mrb[13].mxu0 }
 0xd6d   :  { %v599_v2 = vpop.f32.mrb[14].mxu0 }
 0xd6e   :  { %2113 = vtanh.f32 %v602_v63  ;;  %v1947_v3 = vpop.f32.mrb[15].mxu0  ;;  %v1792_v5 = vmul.f32 -1.442695, %v602_v63 }
 0xd70   :  { %2115 = vpow2.f32 %v1792_v5 }
 0xd78   :  { %v2114_v4 = vpop.eup %2113 }
 0xd79   :  { %615 = vrot.lane.b32.xlu1 %v2114_v4, %s2336_s20 }
 0xd7a   :  { %v2116_v6 = vpop.eup %2115 }
 0xd7b   :  { %v606_v7 = vadd.f32 1.0, %v2116_v6 }
 0xd7d   :  { %2117 = vrcp.f32 %v606_v7 }
 0xd87   :  { %v2118_v9 = vpop.eup %2117 }
 0xd88   :  { %v613_v15 = vmul.f32 %v2118_v9, %v611_v13 }
 0xdeb   :  { %v616_v10 = vpop.permute.xlu1 %615 }
 0xdec   :  { %v618_v11 = vmul.f32 %v2118_v9, %v616_v10 }
 0xdee   :  { %620 = vrot.lane.b32.xlu0 %v618_v11, %s2336_s20 }
 0xe60   :  { %v621_v16 = vpop.permute.xlu0 %620 }
 0xe61   :  { %v623_v17 = vadd.f32 %v621_v16, %v613_v15 }
 0xe63   :  { %2119 = vtanh.f32 %v623_v17  ;;  %v694_v37 = vrot.slane %v623_v17, 6 }
 0xe6d   :  { %v2120_v18 = vpop.eup %2119 }
 0xe6e   :  { %626 = vrot.lane.b32.xlu1 %v2120_v18, %s2336_s20 }
 0xee0   :  { %v627_v19 = vpop.permute.xlu1 %626 }
 0xee1   :  { %v2563_v20 = vmul.f32 %v2118_v9, %v627_v19 }
 0xee3   :  { %v635_v21 = vpack.c.bf16 %v2563_v20, %v2563_v20 }
 0xee5   :  { %637 = vrot.lane.b32.xlu0 %v635_v21, %s2328_s27 }
 0xf57   :  { %v638_v22 = vpop.permute.xlu0 %637 }
 0xf58   :  { %1953 = vmatmul.mubr.msk.bf16.vlgmr.msra.gmra.mrb[12].mxu1 %vm162_vm4, %v638_v22 }
 0xf59   :  { %1965 = vmatpush3.bf16.msra.mxu1 %v2452_v12  ;;  %1968 = vmatprep.mubr.msk.bf16.mxu1 %vm2335_vm0, %v2334_v1 }
 0xf5a   :  { %1966 = vmatprep.subr.bf16.mxu1 %v2334_v1 }
 0xf5d   :  { %1967 = vmatpush3.bf16.msra.mxu1 %v2462_v14 }
 0xf5e   :  { %1980 = vmatprep.subr.bf16.mxu1 %v2334_v1 }
0x102b   :  { %v676_v23 = vpop.f32.mrb[12].mxu1 }
0x102c   :  { %v683_v24 = vrot.slane %v676_v23, 6  ;;  %v1954_v25 = vpop.f32.mrb[13].mxu1 }
0x102d   :  { %v679_v26 = vpop.f32.mrb[14].mxu1 }
0x102e   :  { %v685_v27 = vadd.f32 %v683_v24, %v2490_v33  ;;  %v1955_v28 = vpop.f32.mrb[15].mxu1 }
0x1030   :  { %2121 = vtanh.f32 %v685_v27  ;;  %v1794_v12 = vmul.f32 -1.442695, %v685_v27 }
0x1032   :  { %2123 = vpow2.f32 %v1794_v12  ;;  %v2075_v12 = vld [vmem:[%s2858_s4 + $0x10] sm:$0xff]  }
0x103a   :  { %v2122_v30 = vpop.eup %2121 }
0x103b   :  { %698 = vrot.lane.b32.xlu1 %v2122_v30, %s2336_s20 }
0x103c   :  { %v2124_v31 = vpop.eup %2123 }
0x103d   :  { %v689_v32 = vadd.f32 1.0, %v2124_v31  ;;  %v2625_v31 = vld [vmem:[%s2859_s5 + $0x10] sm:$0xff]  }
0x103f   :  { %2125 = vrcp.f32 %v689_v32  ;;  %v1811_v32 = vld [vmem:[%s2856_s2 + $0x2] sm:$0x3] }
0x1049   :  { %v2126_v34 = vpop.eup %2125 }
0x104a   :  { %v696_v38 = vmul.f32 %v2126_v34, %v694_v37 }
0x10ad   :  { %v699_v14 = vpop.permute.xlu1 %698 }
0x10ae   :  { %v701_v36 = vmul.f32 %v2126_v34, %v699_v14 }
0x10b0   :  { %703 = vrot.lane.b32.xlu0 %v701_v36, %s2336_s20 }
0x1122   :  { %v704_v39 = vpop.permute.xlu0 %703 }
0x1123   :  { %v706_v40 = vadd.f32 %v704_v39, %v696_v38  ;;  %v1812_v38 = vld [vmem:[%s2857_s3 + $0x2] sm:$0x3]  ;;  %s2337_s3 = smov 96  }
0x1125   :  { %2127 = vtanh.f32 %v706_v40  ;;  %v778_v61 = vrot.slane %v706_v40, 6 }
0x112f   :  { %v2128_v41 = vpop.eup %2127 }
0x1130   :  { %709 = vrot.lane.b32.xlu1 %v2128_v41, %s2336_s20 }
0x11a2   :  { %v710_v42 = vpop.permute.xlu1 %709 }
0x11a3   :  { %v2579_v43 = vmul.f32 %v2126_v34, %v710_v42  ;;  %v973_v34 = vpack.c.bf16 %v1811_v32, %v1811_v32 }
0x11a5   :  { %v718_v44 = vpack.c.bf16 %v2579_v43, %v2579_v43 }
0x11a7   :  { %v720_v45 = vrot.slane %v718_v44, 1 }
0x11a9   :  { %721 = vrot.lane.b32.xlu0 %v720_v45, %s2328_s27 }
0x121b   :  { %v722_v46 = vpop.permute.xlu0 %721 }
0x121c   :  { %1961 = vmatmul.mubr.msk.bf16.vlgmr.msra.gmra.mrb[16].mxu0 %vm162_vm4, %v722_v46 }
0x121d   :  { %1976 = vmatprep.mubr.msk.bf16.mxu0 %vm2335_vm0, %v2334_v1  ;;  %1973 = vmatpush3.bf16.msra.mxu0 %v2075_v12 }
0x121e   :  { %1974 = vmatprep.subr.bf16.mxu0 %v2334_v1 }
0x12ef   :  { %v760_v47 = vpop.f32.mrb[16].mxu0 }
0x12f0   :  { %v767_v48 = vrot.slane %v760_v47, 4  ;;  %v1962_v50 = vpop.f32.mrb[17].mxu0 }
0x12f1   :  { %v763_v51 = vpop.f32.mrb[18].mxu0  ;;  %v1807_v50 = vld [vmem:[#allocation6 + $0x1] ss:$0 sm:$0xff] }
0x12f2   :  { %v769_v52 = vadd.f32 %v767_v48, %v2490_v33  ;;  %v1963_v53 = vpop.f32.mrb[19].mxu0 }
0x12f4   :  { %2129 = vtanh.f32 %v769_v52  ;;  %v1796_v55 = vmul.f32 -1.442695, %v769_v52 }
0x12f6   :  { %2131 = vpow2.f32 %v1796_v55 }
0x12fe   :  { %v2130_v54 = vpop.eup %2129 }
0x12ff   :  { %782 = vrot.lane.b32.xlu1 %v2130_v54, %s2336_s20 }
0x1300   :  { %v2132_v56 = vpop.eup %2131 }
0x1301   :  { %v773_v29 = vadd.f32 1.0, %v2132_v56 }
0x1303   :  { %2133 = vrcp.f32 %v773_v29 }
0x130d   :  { %v2134_v57 = vpop.eup %2133 }
0x130e   :  { %v780_v62 = vmul.f32 %v2134_v57, %v778_v61 }
0x1371   :  { %v783_v59 = vpop.permute.xlu1 %782 }
0x1372   :  { %v785_v60 = vmul.f32 %v2134_v57, %v783_v59 }
0x1374   :  { %787 = vrot.lane.b32.xlu0 %v785_v60, %s2336_s20 }
0x13e6   :  { %v788_v63 = vpop.permute.xlu0 %787 }
0x13e7   :  { %v790_v0 = vadd.f32 %v788_v63, %v780_v62 }
0x13e9   :  { %2135 = vtanh.f32 %v790_v0 }
0x13f3   :  { %v2136_v2 = vpop.eup %2135 }
0x13f4   :  { %793 = vrot.lane.b32.xlu1 %v2136_v2, %s2336_s20 }
0x1466   :  { %v794_v3 = vpop.permute.xlu1 %793 }
0x1467   :  { %v796_v4 = vmul.f32 %v2134_v57, %v794_v3 }
0x1469   :  { %v802_v5 = vpack.c.bf16 %v796_v4, %v796_v4 }
0x146b   :  { %v804_v6 = vrot.slane %v802_v5, 2 }
0x146d   :  { %805 = vrot.lane.b32.xlu0 %v804_v6, %s2328_s27 }
0x14df   :  { %v806_v7 = vpop.permute.xlu0 %805 }
0x14e0   :  { %1969 = vmatmul.mubr.msk.bf16.vlgmr.msra.gmra.mrb[16].mxu1 %vm162_vm4, %v806_v7 }
0x14e1   :  { %1984 = vmatprep.mubr.msk.bf16.mxu1 %vm2335_vm0, %v2334_v1  ;;  %1981 = vmatpush3.bf16.msra.mxu1 %v2625_v31 }
0x14e2   :  { %1982 = vmatprep.subr.bf16.mxu1 %v2334_v1 }
0x15b3   :  { %v844_v9 = vpop.f32.mrb[16].mxu1 }
0x15b4   :  { %v851_v10 = vrot.slane %v844_v9, 2  ;;  %v1970_v11 = vpop.f32.mrb[17].mxu1 }
0x15b5   :  { %v847_v13 = vpop.f32.mrb[18].mxu1 }
0x15b6   :  { %v853_v15 = vadd.f32 %v851_v10, %v2490_v33  ;;  %v1971_v16 = vpop.f32.mrb[19].mxu1  ;;  %v862_v33 = vrot.slane %v790_v0, 6 }
0x15b8   :  { %2137 = vtanh.f32 %v853_v15  ;;  %v1798_v18 = vmul.f32 -1.442695, %v853_v15 }
0x15ba   :  { %2139 = vpow2.f32 %v1798_v18 }
0x15c2   :  { %v2138_v17 = vpop.eup %2137 }
0x15c3   :  { %866 = vrot.lane.b32.xlu1 %v2138_v17, %s2336_s20 }
0x15c4   :  { %v2140_v19 = vpop.eup %2139 }
0x15c5   :  { %v857_v21 = vadd.f32 1.0, %v2140_v19 }
0x15c7   :  { %2141 = vrcp.f32 %v857_v21 }
0x15d1   :  { %v2142_v22 = vpop.eup %2141 }
0x15d2   :  { %v864_v25 = vmul.f32 %v2142_v22, %v862_v33 }
0x1635   :  { %v867_v23 = vpop.permute.xlu1 %866 }
0x1636   :  { %v869_v24 = vmul.f32 %v2142_v22, %v867_v23 }
0x1638   :  { %871 = vrot.lane.b32.xlu0 %v869_v24, %s2336_s20 }
0x163c   :  { %295 = vrot.lane.b32.xlu0 %v2499_v49, %s2328_s27 }
0x1640   :  { %464 = vrot.lane.b32.xlu0 %v2531_v35, %s2328_s27 }
0x1644   :  { %631 = vrot.lane.b32.xlu0 %v2563_v20, %s2328_s27 }
0x1648   :  { %798 = vrot.lane.b32.xlu0 %v796_v4, %s2328_s27 }
0x16aa   :  { %v872_v26 = vpop.permute.xlu0 %871 }
0x16ab   :  { %v2605_v27 = vadd.f32 %v872_v26, %v864_v25 }
0x16ad   :  { %2143 = vtanh.f32 %v2605_v27 }
0x16ae   :  { %v296_v28 = vpop.permute.xlu0 %295 }
0x16af   :  { %299 = vst.msk [vmem:[#allocation2] sm:$0x3] %vm298_vm5, %v296_v28 }
0x16b2   :  { %v465_v49 = vpop.permute.xlu0 %464 }
0x16b3   :  { %468 = vst.msk [vmem:[#allocation2] sm:$0x30] %vm467_vm6, %v465_v49 }
0x16b6   :  { %v632_v35 = vpop.permute.xlu0 %631 }
0x16b7   :  { %v2144_v30 = vpop.eup %2143  ;;  %634 = vst.msk [vmem:[#allocation2 + $0x8] sm:$0x3] %vm298_vm5, %v632_v35 }
0x16b8   :  { %877 = vrot.lane.b32.xlu1 %v2144_v30, %s2336_s20 }
0x16ba   :  { %v799_v20 = vpop.permute.xlu0 %798 }
0x16bb   :  { %801 = vst.msk [vmem:[#allocation2 + $0x8] sm:$0x30] %vm467_vm6, %v799_v20 }
0x16bc   :  { %379 = vrot.lane.b32.xlu1 %v2515_v8, %s2328_s27  ;;  %v2077_v8 = vld [vmem:[%s2858_s4 + $0x18] sm:$0xff]  }
0x16bd   :  { %1975 = vmatpush3.bf16.msra.mxu0 %v2077_v8 }
0x16be   :  { %1988 = vmatprep.subr.bf16.mxu0 %v2334_v1 }
0x16c0   :  { %549 = vrot.lane.b32.xlu1 %v2547_v58, %s2328_s27  ;;  %v2634_v58 = vld [vmem:[%s2859_s5 + $0x18] sm:$0xff]  }
0x16c1   :  { %1983 = vmatpush3.bf16.msra.mxu1 %v2634_v58 }
0x16c2   :  { %1996 = vmatprep.subr.bf16.mxu1 %v2334_v1 }
0x16c4   :  { %714 = vrot.lane.b32.xlu1 %v2579_v43, %s2328_s27  ;;  %1985 = vmatmul.mubr.msk.bf16.vlgmr.msra.gmra.mrb[20].mxu1 %vm162_vm4, %v973_v34 }
0x16c5   :  { %1997 = vmatpush3.bf16.msra.mxu1 %v2625_v31  ;;  %2000 = vmatprep.mubr.msk.bf16.mxu1 %vm2335_vm0, %v2334_v1 }
0x16c6   :  { %1998 = vmatprep.subr.bf16.mxu1 %v2334_v1 }
0x16c9   :  { %1999 = vmatpush3.bf16.msra.mxu1 %v2634_v58 }
0x16ca   :  { %2012 = vmatprep.subr.bf16.mxu1 %v2334_v1 }
0x172a   :  { %v878_v14 = vpop.permute.xlu1 %877 }
0x172b   :  { %v880_v36 = vmul.f32 %v2142_v22, %v878_v14 }
0x172d   :  { %882 = vrot.lane.b32.xlu1 %v880_v36, %s2328_s27 }
0x172e   :  { %v380_v37 = vpop.permute.xlu1 %379 }
0x172f   :  { %383 = vst.msk [vmem:[#allocation2] sm:$0xc] %vm382_vm7, %v380_v37 }
0x1731   :  { %1038 = vrot.lane.b32.xlu1 %v1812_v38, %s2336_s20 }
0x1732   :  { %v550_v39 = vpop.permute.xlu1 %549 }
0x1733   :  { %553 = vst.msk [vmem:[#allocation2] sm:$0xc0] %vm552_vm8, %v550_v39 }
0x1736   :  { %v715_v40 = vpop.permute.xlu1 %714 }
0x1737   :  { %717 = vst.msk [vmem:[#allocation2 + $0x8] sm:$0xc] %vm382_vm7, %v715_v40 }
0x173a   :  { %v892_v42 = vld [vmem:[#allocation2] sm:$0xff] }
0x1797   :  { %v1023_v45 = vpop.f32.mrb[20].mxu1 }
0x1798   :  { %v1986_v46 = vpop.f32.mrb[21].mxu1 }
0x1799   :  { %v1026_v47 = vpop.f32.mrb[22].mxu1 }
0x179a   :  { %v1987_v48 = vpop.f32.mrb[23].mxu1 }
0x179f   :  { %v883_v41 = vpop.permute.xlu1 %882 }
0x17a0   :  { %885 = vst.msk [vmem:[#allocation2 + $0x8] sm:$0xc0] %vm552_vm8, %v883_v41  ;;  %886 = vst.msk [vmem:[#allocation9 - $0x6] sm:$0xc0] %vm552_vm8, %v883_v41 }
0x17a3   :  { %v1039_v2 = vpop.permute.xlu1 %1038 }
0x17a7   :  { %v893_v43 = vld [vmem:[#allocation2 + $0x8] sm:$0xff] }
0x17a8   :  { %v894_v44 = vpack.c.bf16 %v893_v43, %v892_v42 }
0x17aa   :  { %1977 = vmatmul.mubr.msk.bf16.vlgmr.msra.gmra.mrb[20].mxu0 %vm162_vm4, %v894_v44 }
0x17ab   :  { %1989 = vmatpush3.bf16.msra.mxu0 %v2625_v31  ;;  %1992 = vmatprep.mubr.msk.bf16.mxu0 %vm2335_vm0, %v2334_v1 }
0x17ac   :  { %1990 = vmatprep.subr.bf16.mxu0 %v2334_v1 }
0x17af   :  { %1991 = vmatpush3.bf16.msra.mxu0 %v2634_v58 }
0x17b0   :  { %2004 = vmatprep.subr.bf16.mxu0 %v2334_v1 }
0x187d   :  { %v962_v51 = vpop.f32.mrb[20].mxu0 }
0x187e   :  { %v2668_v52 = vadd.f32 %v1807_v50, %v962_v51  ;;  %v1978_v53 = vpop.f32.mrb[21].mxu0 }
0x187f   :  { %v965_v54 = vpop.f32.mrb[22].mxu0 }
0x1880   :  { %v1029_v55 = vadd.f32 %v1023_v45, %v2668_v52  ;;  %v2671_v56 = vadd.f32 %v1807_v50, %v965_v54  ;;  %v1979_v29 = vpop.f32.mrb[23].mxu0 }
0x1882   :  { %2145 = vtanh.f32 %v1029_v55  ;;  %v1816_v59 = vmul.f32 -1.442695, %v1029_v55 }
0x1884   :  { %2147 = vpow2.f32 %v1816_v59 }
0x188c   :  { %v2146_v57 = vpop.eup %2145 }
0x188d   :  { %1043 = vrot.lane.b32.xlu0 %v2146_v57, %s2336_s20 }
0x188e   :  { %v2148_v60 = vpop.eup %2147 }
0x188f   :  { %v1033_v61 = vadd.f32 1.0, %v2148_v60 }
0x1891   :  { %2149 = vrcp.f32 %v1033_v61 }
0x189b   :  { %v2150_v62 = vpop.eup %2149 }
0x189c   :  { %v1041_v3 = vmul.f32 %v2150_v62, %v1039_v2 }
0x18ff   :  { %v1044_v63 = vpop.permute.xlu0 %1043 }
0x1900   :  { %v1046_v0 = vmul.f32 %v2150_v62, %v1044_v63 }
0x1902   :  { %1048 = vrot.lane.b32.xlu0 %v1046_v0, %s2336_s20 }
0x1974   :  { %v1049_v4 = vpop.permute.xlu0 %1048 }
0x1975   :  { %v1051_v5 = vadd.f32 %v1049_v4, %v1041_v3 }
0x1977   :  { %2151 = vtanh.f32 %v1051_v5  ;;  %v1122_v28 = vrot.slane %v1051_v5, 6 }
0x1981   :  { %v2152_v6 = vpop.eup %2151 }
0x1982   :  { %1054 = vrot.lane.b32.xlu1 %v2152_v6, %s2336_s20 }
0x19f4   :  { %v1055_v7 = vpop.permute.xlu1 %1054 }
0x19f5   :  { %v2676_v9 = vmul.f32 %v2150_v62, %v1055_v7 }
0x19f7   :  { %v1063_v10 = vpack.c.bf16 %v2676_v9, %v2676_v9 }
0x19f9   :  { %1065 = vrot.lane.b32.xlu0 %v1063_v10, %s2328_s27 }
0x1a6b   :  { %v1066_v11 = vpop.permute.xlu0 %1065 }
0x1a6c   :  { %1993 = vmatmul.mubr.msk.bf16.vlgmr.msra.gmra.mrb[24].mxu0 %vm162_vm4, %v1066_v11 }
0x1a6d   :  { %2005 = vmatpush3.bf16.msra.mxu0 %v2625_v31  ;;  %2008 = vmatprep.mubr.msk.bf16.mxu0 %vm2335_vm0, %v2334_v1 }
0x1a6e   :  { %2006 = vmatprep.subr.bf16.mxu0 %v2334_v1 }
0x1a71   :  { %2007 = vmatpush3.bf16.msra.mxu0 %v2634_v58 }
0x1a72   :  { %2020 = vmatprep.subr.bf16.mxu0 %v2334_v1 }
0x1b3f   :  { %v1104_v13 = vpop.f32.mrb[24].mxu0 }
0x1b40   :  { %v1111_v15 = vrot.slane %v1104_v13, 6  ;;  %v1994_v16 = vpop.f32.mrb[25].mxu0 }
0x1b41   :  { %v1107_v17 = vpop.f32.mrb[26].mxu0 }
0x1b42   :  { %v1113_v18 = vadd.f32 %v1111_v15, %v2668_v52  ;;  %v1995_v19 = vpop.f32.mrb[27].mxu0 }
0x1b44   :  { %2153 = vtanh.f32 %v1113_v18  ;;  %v1818_v22 = vmul.f32 -1.442695, %v1113_v18 }
0x1b46   :  { %2155 = vpow2.f32 %v1818_v22 }
0x1b4e   :  { %v2154_v21 = vpop.eup %2153 }
0x1b4f   :  { %1126 = vrot.lane.b32.xlu1 %v2154_v21, %s2336_s20 }
0x1b50   :  { %v2156_v23 = vpop.eup %2155 }
0x1b51   :  { %v1117_v24 = vadd.f32 1.0, %v2156_v23 }
0x1b53   :  { %2157 = vrcp.f32 %v1117_v24 }
0x1b5d   :  { %v2158_v33 = vpop.eup %2157 }
0x1b5e   :  { %v1124_v49 = vmul.f32 %v2158_v33, %v1122_v28 }
0x1bc1   :  { %v1127_v25 = vpop.permute.xlu1 %1126 }
0x1bc2   :  { %v1129_v26 = vmul.f32 %v2158_v33, %v1127_v25 }
0x1bc4   :  { %1131 = vrot.lane.b32.xlu0 %v1129_v26, %s2336_s20 }
0x1c36   :  { %v1132_v35 = vpop.permute.xlu0 %1131 }
0x1c37   :  { %v1134_v30 = vadd.f32 %v1132_v35, %v1124_v49 }
0x1c39   :  { %2159 = vtanh.f32 %v1134_v30  ;;  %v1206_v50 = vrot.slane %v1134_v30, 6 }
0x1c43   :  { %v2160_v20 = vpop.eup %2159 }
0x1c44   :  { %1137 = vrot.lane.b32.xlu1 %v2160_v20, %s2336_s20 }
0x1cb6   :  { %v1138_v12 = vpop.permute.xlu1 %1137 }
0x1cb7   :  { %v2692_v8 = vmul.f32 %v2158_v33, %v1138_v12 }
0x1cb9   :  { %v1146_v32 = vpack.c.bf16 %v2692_v8, %v2692_v8 }
0x1cbb   :  { %v1148_v34 = vrot.slane %v1146_v32, 1 }
0x1cbd   :  { %1149 = vrot.lane.b32.xlu0 %v1148_v34, %s2328_s27 }
0x1d2f   :  { %v1150_v14 = vpop.permute.xlu0 %1149 }
0x1d30   :  { %2001 = vmatmul.mubr.msk.bf16.vlgmr.msra.gmra.mrb[24].mxu1 %vm162_vm4, %v1150_v14 }
0x1d31   :  { %2013 = vmatpush3.bf16.msra.mxu1 %v2625_v31  ;;  %2016 = vmatprep.mubr.msk.bf16.mxu1 %vm2335_vm0, %v2334_v1 }
0x1d32   :  { %2014 = vmatprep.subr.bf16.mxu1 %v2334_v1 }
0x1d35   :  { %2015 = vmatpush3.bf16.msra.mxu1 %v2634_v58 }
0x1d36   :  { %2028 = vmatprep.subr.bf16.mxu1 %v2334_v1 }
0x1e03   :  { %v1188_v36 = vpop.f32.mrb[24].mxu1 }
0x1e04   :  { %v1195_v37 = vrot.slane %v1188_v36, 4  ;;  %v2002_v38 = vpop.f32.mrb[25].mxu1 }
0x1e05   :  { %v1191_v39 = vpop.f32.mrb[26].mxu1 }
0x1e06   :  { %v1197_v40 = vadd.f32 %v1195_v37, %v2668_v52  ;;  %v2003_v41 = vpop.f32.mrb[27].mxu1 }
0x1e08   :  { %2161 = vtanh.f32 %v1197_v40  ;;  %v1820_v43 = vmul.f32 -1.442695, %v1197_v40 }
0x1e0a   :  { %2163 = vpow2.f32 %v1820_v43 }
0x1e12   :  { %v2162_v42 = vpop.eup %2161 }
0x1e13   :  { %1210 = vrot.lane.b32.xlu1 %v2162_v42, %s2336_s20 }
0x1e14   :  { %v2164_v44 = vpop.eup %2163 }
0x1e15   :  { %v1201_v45 = vadd.f32 1.0, %v2164_v44 }
0x1e17   :  { %2165 = vrcp.f32 %v1201_v45 }
0x1e21   :  { %v2166_v46 = vpop.eup %2165 }
0x1e22   :  { %v1208_v51 = vmul.f32 %v2166_v46, %v1206_v50 }
0x1e85   :  { %v1211_v47 = vpop.permute.xlu1 %1210 }
0x1e86   :  { %v1213_v48 = vmul.f32 %v2166_v46, %v1211_v47 }
0x1e88   :  { %1215 = vrot.lane.b32.xlu0 %v1213_v48, %s2336_s20 }
0x1efa   :  { %v1216_v53 = vpop.permute.xlu0 %1215 }
0x1efb   :  { %v1218_v54 = vadd.f32 %v1216_v53, %v1208_v51 }
0x1efd   :  { %2167 = vtanh.f32 %v1218_v54  ;;  %v1290_v16 = vrot.slane %v1218_v54, 6 }
0x1f07   :  { %v2168_v55 = vpop.eup %2167 }
0x1f08   :  { %1221 = vrot.lane.b32.xlu1 %v2168_v55, %s2336_s20 }
0x1f7a   :  { %v1222_v29 = vpop.permute.xlu1 %1221 }
0x1f7b   :  { %v2708_v57 = vmul.f32 %v2166_v46, %v1222_v29 }
0x1f7d   :  { %v1230_v59 = vpack.c.bf16 %v2708_v57, %v2708_v57 }
0x1f7f   :  { %v1232_v60 = vrot.slane %v1230_v59, 2 }
0x1f81   :  { %1233 = vrot.lane.b32.xlu0 %v1232_v60, %s2328_s27 }
0x1ff3   :  { %v1234_v61 = vpop.permute.xlu0 %1233 }
0x1ff4   :  { %2009 = vmatmul.mubr.msk.bf16.vlgmr.msra.gmra.mrb[28].mxu0 %vm162_vm4, %v1234_v61 }
0x1ff5   :  { %2021 = vmatpush3.bf16.msra.mxu0 %v2625_v31  ;;  %2024 = vmatprep.mubr.msk.bf16.mxu0 %vm2335_vm0, %v2334_v1 }
0x1ff6   :  { %2022 = vmatprep.subr.bf16.mxu0 %v2334_v1 }
0x1ff9   :  { %2023 = vmatpush3.bf16.msra.mxu0 %v2634_v58 }
0x1ffa   :  { %2036 = vmatprep.subr.bf16.mxu0 %v2334_v1 }
0x20c7   :  { %v1272_v62 = vpop.f32.mrb[28].mxu0 }
0x20c8   :  { %v1279_v63 = vrot.slane %v1272_v62, 2  ;;  %v2010_v0 = vpop.f32.mrb[29].mxu0 }
0x20c9   :  { %v1275_v2 = vpop.f32.mrb[30].mxu0 }
0x20ca   :  { %v1281_v3 = vadd.f32 %v1279_v63, %v2668_v52  ;;  %v2011_v4 = vpop.f32.mrb[31].mxu0 }
0x20cc   :  { %2169 = vtanh.f32 %v1281_v3  ;;  %v1822_v6 = vmul.f32 -1.442695, %v1281_v3 }
0x20ce   :  { %2171 = vpow2.f32 %v1822_v6 }
0x20d6   :  { %v2170_v5 = vpop.eup %2169 }
0x20d7   :  { %1294 = vrot.lane.b32.xlu1 %v2170_v5, %s2336_s20 }
0x20d8   :  { %v2172_v7 = vpop.eup %2171 }
0x20d9   :  { %v1285_v10 = vadd.f32 1.0, %v2172_v7 }
0x20db   :  { %2173 = vrcp.f32 %v1285_v10 }
0x20e5   :  { %v2174_v11 = vpop.eup %2173 }
0x20e6   :  { %v1292_v17 = vmul.f32 %v2174_v11, %v1290_v16 }
0x2149   :  { %v1295_v13 = vpop.permute.xlu1 %1294 }
0x214a   :  { %v1297_v15 = vmul.f32 %v2174_v11, %v1295_v13 }
0x214c   :  { %1299 = vrot.lane.b32.xlu0 %v1297_v15, %s2336_s20 }
0x21be   :  { %v1300_v18 = vpop.permute.xlu0 %1299 }
0x21bf   :  { %v1302_v19 = vadd.f32 %v1300_v18, %v1292_v17 }
0x21c1   :  { %2175 = vtanh.f32 %v1302_v19  ;;  %v1371_v37 = vrot.slane %v1302_v19, 6 }
0x21cb   :  { %v2176_v52 = vpop.eup %2175 }
0x21cc   :  { %1305 = vrot.lane.b32.xlu1 %v2176_v52, %s2336_s20 }
0x223e   :  { %v1306_v21 = vpop.permute.xlu1 %1305 }
0x223f   :  { %v2724_v22 = vmul.f32 %v2174_v11, %v1306_v21 }
0x2241   :  { %v1314_v23 = vpack.c.bf16 %v2724_v22, %v2724_v22 }
0x2243   :  { %v1316_v24 = vrot.slane %v1314_v23, 3 }
0x2245   :  { %1317 = vrot.lane.b32.xlu0 %v1316_v24, %s2328_s27 }
0x22b7   :  { %v1318_v33 = vpop.permute.xlu0 %1317 }
0x22b8   :  { %2017 = vmatmul.mubr.msk.bf16.vlgmr.msra.gmra.mrb[28].mxu1 %vm162_vm4, %v1318_v33 }
0x22b9   :  { %2029 = vmatpush3.bf16.msra.mxu1 %v2625_v31  ;;  %2032 = vmatprep.mubr.msk.bf16.mxu1 %vm2335_vm0, %v2334_v1 }
0x22ba   :  { %2030 = vmatprep.subr.bf16.mxu1 %v2334_v1 }
0x22bd   :  { %2031 = vmatpush3.bf16.msra.mxu1 %v2634_v58 }
0x22be   :  { %2044 = vmatprep.subr.bf16.mxu1 %v2334_v1 }
0x238b   :  { %v1356_v25 = vpop.f32.mrb[28].mxu1 }
0x238c   :  { %v1362_v26 = vadd.f32 %v1356_v25, %v2671_v56  ;;  %v2018_v28 = vpop.f32.mrb[29].mxu1 }
0x238d   :  { %v1359_v49 = vpop.f32.mrb[30].mxu1 }
0x238e   :  { %2177 = vtanh.f32 %v1362_v26  ;;  %v2019_v35 = vpop.f32.mrb[31].mxu1  ;;  %v1824_v20 = vmul.f32 -1.442695, %v1362_v26 }
0x2390   :  { %2179 = vpow2.f32 %v1824_v20 }
0x2398   :  { %v2178_v30 = vpop.eup %2177 }
0x2399   :  { %1375 = vrot.lane.b32.xlu1 %v2178_v30, %s2336_s20 }
0x239a   :  { %v2180_v12 = vpop.eup %2179 }
0x239b   :  { %v1366_v32 = vadd.f32 1.0, %v2180_v12 }
0x239d   :  { %2181 = vrcp.f32 %v1366_v32 }
0x23a7   :  { %v2182_v34 = vpop.eup %2181 }
0x23a8   :  { %v1373_v38 = vmul.f32 %v2182_v34, %v1371_v37 }
0x240b   :  { %v1376_v14 = vpop.permute.xlu1 %1375 }
0x240c   :  { %v1378_v36 = vmul.f32 %v2182_v34, %v1376_v14 }
0x240e   :  { %1380 = vrot.lane.b32.xlu0 %v1378_v36, %s2336_s20 }
0x2480   :  { %v1381_v39 = vpop.permute.xlu0 %1380 }
0x2481   :  { %v1383_v40 = vadd.f32 %v1381_v39, %v1373_v38 }
0x2483   :  { %2183 = vtanh.f32 %v1383_v40 }
0x248d   :  { %v2184_v41 = vpop.eup %2183 }
0x248e   :  { %1386 = vrot.lane.b32.xlu1 %v2184_v41, %s2336_s20 }
0x2500   :  { %v1387_v42 = vpop.permute.xlu1 %1386 }
0x2501   :  { %v2740_v43 = vmul.f32 %v2182_v34, %v1387_v42 }
0x2503   :  { %v1395_v44 = vpack.c.bf16 %v2740_v43, %v2740_v43 }
0x2505   :  { %1397 = vrot.lane.b32.xlu0 %v1395_v44, %s2328_s27 }
0x2577   :  { %v1398_v45 = vpop.permute.xlu0 %1397 }
0x2578   :  { %2025 = vmatmul.mubr.msk.bf16.vlgmr.msra.gmra.mrb[32].mxu0 %vm162_vm4, %v1398_v45 }
0x2579   :  { %2037 = vmatpush3.bf16.msra.mxu0 %v2625_v31  ;;  %2040 = vmatprep.mubr.msk.bf16.mxu0 %vm2335_vm0, %v2334_v1 }
0x257a   :  { %2038 = vmatprep.subr.bf16.mxu0 %v2334_v1 }
0x257d   :  { %2039 = vmatpush3.bf16.msra.mxu0 %v2634_v58  ;;  %v1454_v58 = vrot.slane %v1383_v40, 6 }
0x264b   :  { %v1436_v46 = vpop.f32.mrb[32].mxu0 }
0x264c   :  { %v1443_v47 = vrot.slane %v1436_v46, 6  ;;  %v2026_v48 = vpop.f32.mrb[33].mxu0 }
0x264d   :  { %v1439_v50 = vpop.f32.mrb[34].mxu0 }
0x264e   :  { %v1445_v51 = vadd.f32 %v1443_v47, %v2671_v56  ;;  %v2027_v53 = vpop.f32.mrb[35].mxu0 }
0x2650   :  { %2185 = vtanh.f32 %v1445_v51  ;;  %v1826_v55 = vmul.f32 -1.442695, %v1445_v51 }
0x2652   :  { %2187 = vpow2.f32 %v1826_v55 }
0x265a   :  { %v2186_v54 = vpop.eup %2185 }
0x265b   :  { %1458 = vrot.lane.b32.xlu1 %v2186_v54, %s2336_s20 }
0x265c   :  { %v2188_v31 = vpop.eup %2187 }
0x265d   :  { %v1449_v29 = vadd.f32 1.0, %v2188_v31  ;;  %v2079_v31 = vld [vmem:[%s2861_s7] sm:$0xff]  }
0x265f   :  { %2189 = vrcp.f32 %v1449_v29 }
0x2669   :  { %v2190_v59 = vpop.eup %2189 }
0x266a   :  { %v1456_v62 = vmul.f32 %v2190_v59, %v1454_v58 }
0x26cd   :  { %v1459_v60 = vpop.permute.xlu1 %1458 }
0x26ce   :  { %v1461_v61 = vmul.f32 %v2190_v59, %v1459_v60 }
0x26d0   :  { %1463 = vrot.lane.b32.xlu0 %v1461_v61, %s2336_s20 }
0x2742   :  { %v1464_v63 = vpop.permute.xlu0 %1463 }
0x2743   :  { %v1466_v0 = vadd.f32 %v1464_v63, %v1456_v62 }
0x2745   :  { %2191 = vtanh.f32 %v1466_v0  ;;  %v1538_v25 = vrot.slane %v1466_v0, 6 }
0x274f   :  { %v2192_v2 = vpop.eup %2191 }
0x2750   :  { %1469 = vrot.lane.b32.xlu1 %v2192_v2, %s2336_s20 }
0x27c2   :  { %v1470_v3 = vpop.permute.xlu1 %1469 }
0x27c3   :  { %v2755_v4 = vmul.f32 %v2190_v59, %v1470_v3 }
0x27c5   :  { %v1478_v5 = vpack.c.bf16 %v2755_v4, %v2755_v4 }
0x27c7   :  { %v1480_v6 = vrot.slane %v1478_v5, 1 }
0x27c9   :  { %1481 = vrot.lane.b32.xlu0 %v1480_v6, %s2328_s27 }
0x283b   :  { %v1482_v7 = vpop.permute.xlu0 %1481 }
0x283c   :  { %2033 = vmatmul.mubr.msk.bf16.vlgmr.msra.gmra.mrb[32].mxu1 %vm162_vm4, %v1482_v7 }
0x283d   :  { %2048 = vmatprep.mubr.msk.bf16.mxu1 %vm2335_vm0, %v2334_v1  ;;  %2045 = vmatpush3.bf16.msra.mxu1 %v2079_v31 }
0x283e   :  { %2046 = vmatprep.subr.bf16.mxu1 %v2334_v1 }
0x290f   :  { %v1520_v10 = vpop.f32.mrb[32].mxu1 }
0x2910   :  { %v1527_v11 = vrot.slane %v1520_v10, 4  ;;  %v2034_v13 = vpop.f32.mrb[33].mxu1 }
0x2911   :  { %v1523_v15 = vpop.f32.mrb[34].mxu1 }
0x2912   :  { %v1529_v16 = vadd.f32 %v1527_v11, %v2671_v56  ;;  %v2035_v17 = vpop.f32.mrb[35].mxu1 }
0x2914   :  { %2193 = vtanh.f32 %v1529_v16  ;;  %v1828_v19 = vmul.f32 -1.442695, %v1529_v16 }
0x2916   :  { %2195 = vpow2.f32 %v1828_v19 }
0x291e   :  { %v2194_v18 = vpop.eup %2193 }
0x291f   :  { %1542 = vrot.lane.b32.xlu1 %v2194_v18, %s2336_s20 }
0x2920   :  { %v2196_v52 = vpop.eup %2195 }
0x2921   :  { %v1533_v21 = vadd.f32 1.0, %v2196_v52 }
0x2923   :  { %2197 = vrcp.f32 %v1533_v21 }
0x292d   :  { %v2198_v23 = vpop.eup %2197 }
0x292e   :  { %v1540_v26 = vmul.f32 %v2198_v23, %v1538_v25 }
0x2991   :  { %v1543_v24 = vpop.permute.xlu1 %1542 }
0x2992   :  { %v1545_v33 = vmul.f32 %v2198_v23, %v1543_v24 }
0x2994   :  { %1547 = vrot.lane.b32.xlu0 %v1545_v33, %s2336_s20 }
0x2a06   :  { %v1548_v28 = vpop.permute.xlu0 %1547 }
0x2a07   :  { %v1550_v49 = vadd.f32 %v1548_v28, %v1540_v26 }
0x2a09   :  { %2199 = vtanh.f32 %v1550_v49 }
0x2a13   :  { %v2200_v35 = vpop.eup %2199 }
0x2a14   :  { %1553 = vrot.lane.b32.xlu1 %v2200_v35, %s2336_s20 }
0x2a86   :  { %v1554_v30 = vpop.permute.xlu1 %1553 }
0x2a87   :  { %v1556_v20 = vmul.f32 %v2198_v23, %v1554_v30 }
0x2a89   :  { %v1562_v12 = vpack.c.bf16 %v1556_v20, %v1556_v20 }
0x2a8b   :  { %v1564_v32 = vrot.slane %v1562_v12, 2 }
0x2a8d   :  { %1565 = vrot.lane.b32.xlu0 %v1564_v32, %s2328_s27 }
0x2aff   :  { %v1566_v34 = vpop.permute.xlu0 %1565 }
0x2b00   :  { %2041 = vmatmul.mubr.msk.bf16.vlgmr.msra.gmra.mrb[36].mxu0 %vm162_vm4, %v1566_v34 }
0x2bd3   :  { %v1604_v14 = vpop.f32.mrb[36].mxu0 }
0x2bd4   :  { %v1611_v36 = vrot.slane %v1604_v14, 2  ;;  %v2042_v37 = vpop.f32.mrb[37].mxu0 }
0x2bd5   :  { %v1607_v38 = vpop.f32.mrb[38].mxu0 }
0x2bd6   :  { %v1613_v39 = vadd.f32 %v1611_v36, %v2671_v56  ;;  %v2043_v40 = vpop.f32.mrb[39].mxu0  ;;  %v1622_v56 = vrot.slane %v1550_v49, 6 }
0x2bd8   :  { %2201 = vtanh.f32 %v1613_v39  ;;  %v1830_v42 = vmul.f32 -1.442695, %v1613_v39 }
0x2bda   :  { %2203 = vpow2.f32 %v1830_v42 }
0x2be2   :  { %v2202_v41 = vpop.eup %2201 }
0x2be3   :  { %1626 = vrot.lane.b32.xlu1 %v2202_v41, %s2336_s20 }
0x2be4   :  { %v2204_v44 = vpop.eup %2203 }
0x2be5   :  { %v1617_v45 = vadd.f32 1.0, %v2204_v44 }
0x2be7   :  { %2205 = vrcp.f32 %v1617_v45 }
0x2bf1   :  { %v2206_v46 = vpop.eup %2205 }
0x2bf2   :  { %v1624_v50 = vmul.f32 %v2206_v46, %v1622_v56 }
0x2c55   :  { %v1627_v47 = vpop.permute.xlu1 %1626 }
0x2c56   :  { %v1629_v48 = vmul.f32 %v2206_v46, %v1627_v47 }
0x2c58   :  { %1631 = vrot.lane.b32.xlu0 %v1629_v48, %s2336_s20 }
0x2c5c   :  { %1059 = vrot.lane.b32.xlu0 %v2676_v9, %s2328_s27 }
0x2c60   :  { %1226 = vrot.lane.b32.xlu0 %v2708_v57, %s2328_s27 }
0x2c64   :  { %1391 = vrot.lane.b32.xlu0 %v2740_v43, %s2328_s27 }
0x2c68   :  { %1558 = vrot.lane.b32.xlu0 %v1556_v20, %s2328_s27 }
0x2c6c   :  { %888 = vrot.lane.b32.xlu0 %v2605_v27, %s2337_s3 }
0x2cca   :  { %v1632_v51 = vpop.permute.xlu0 %1631 }
0x2ccb   :  { %v1634_v53 = vadd.f32 %v1632_v51, %v1624_v50 }
0x2ccd   :  { %2207 = vtanh.f32 %v1634_v53 }
0x2cce   :  { %v1060_v54 = vpop.permute.xlu0 %1059 }
0x2ccf   :  { %1062 = vst.msk [vmem:[#allocation2] sm:$0x3] %vm298_vm5, %v1060_v54 }
0x2cd2   :  { %v1227_v9 = vpop.permute.xlu0 %1226 }
0x2cd3   :  { %1229 = vst.msk [vmem:[#allocation2] sm:$0x30] %vm467_vm6, %v1227_v9 }
0x2cd6   :  { %v1392_v57 = vpop.permute.xlu0 %1391 }
0x2cd7   :  { %v2208_v55 = vpop.eup %2207  ;;  %1394 = vst.msk [vmem:[#allocation2 + $0x8] sm:$0x3] %vm298_vm5, %v1392_v57 }
0x2cd8   :  { %1637 = vrot.lane.b32.xlu1 %v2208_v55, %s2336_s20 }
0x2cda   :  { %v1559_v43 = vpop.permute.xlu0 %1558 }
0x2cdb   :  { %1561 = vst.msk [vmem:[#allocation2 + $0x8] sm:$0x30] %vm467_vm6, %v1559_v43 }
0x2cdc   :  { %1142 = vrot.lane.b32.xlu1 %v2692_v8, %s2328_s27  ;;  %v2080_v8 = vld [vmem:[%s2861_s7 + $0x8] sm:$0xff]   ;;  %s2338_s7 = smov [#allocation9]  }
0x2cdd   :  { %2047 = vmatpush3.bf16.msra.mxu1 %v2080_v8 }
0x2cde   :  { %v889_v27 = vpop.permute.xlu0 %888 }
0x2cdf   :  { %891 = vst.msk [vmem:[#allocation11 - $0x6] sm:$0xc0] %vm552_vm8, %v889_v27 }
0x2ce0   :  { %1310 = vrot.lane.b32.xlu1 %v2724_v22, %s2328_s27 }
0x2ce4   :  { %1474 = vrot.lane.b32.xlu1 %v2755_v4, %s2328_s27 }
0x2d4a   :  { %v1638_v29 = vpop.permute.xlu1 %1637 }
0x2d4b   :  { %v1640_v59 = vmul.f32 %v2206_v46, %v1638_v29 }
0x2d4d   :  { %1642 = vrot.lane.b32.xlu1 %v1640_v59, %s2328_s27  ;;  %s1743_s27 = sshll.u32 %s2338_s7, 4  ;;  %s1744_s27 = int_to_ptr.vmem [resolvable:$true] %s1743_s27 }
0x2d4e   :  { %v1143_v22 = vpop.permute.xlu1 %1142  ;;  %s2253_s14 = scalar_lea.vmem %s1744_s27, 64  ;;  %p2258_p3 = scmp.lt.s32.totalorder %s1744_s27, %s1744_s27 }
0x2d4f   :  { %1145 = vst.msk [vmem:[#allocation2] sm:$0xc] %vm382_vm7, %v1143_v22  ;;  %p2254_p2 = scmp.ne.s32.totalorder %s1744_s27, %s2253_s14  ;;  %p2259_p4 = scmp.lt.s32.totalorder %s2253_s14, %s2253_s14 }
0x2d51   :  { %1649 = vrot.lane.b32.xlu1 %v1634_v53, %s2337_s3  ;;  %p2260_p5 = por %p2259_p4, %p2258_p3 }
0x2d52   :  { %v1311_v60 = vpop.permute.xlu1 %1310 }
0x2d53   :  { %1313 = vst.msk [vmem:[#allocation2] sm:$0xc0] %vm552_vm8, %v1311_v60  ;;  %p2261_p6 = pnand %p2260_p5, %p2254_p2 }
0x2d56   :  { %v1475_v61 = vpop.permute.xlu1 %1474 }
0x2d57   :  { %1477 = vst.msk [vmem:[#allocation2 + $0x8] sm:$0xc] %vm382_vm7, %v1475_v61 }
0x2d5a   :  { %v1654_v62 = vld [vmem:[#allocation2] sm:$0xff] }
0x2dbf   :  { %v1643_v1 = vpop.permute.xlu1 %1642 }
0x2dc0   :  { %1645 = vst.msk [vmem:[#allocation2 + $0x8] sm:$0xc0] %vm552_vm8, %v1643_v1  ;;  %1647 = vst.msk [vmem:[#allocation9 - $0x4] sm:$0xc0] %vm552_vm8, %v1643_v1 }
0x2dc3   :  { %v1650_v58 = vpop.permute.xlu1 %1649 }
0x2dc4   :  { %1653 = vst.msk [vmem:[#allocation11 - $0x4] sm:$0xc0] %vm552_vm8, %v1650_v58 }
0x2dc7   :  { %v1655_v63 = vld [vmem:[#allocation2 + $0x8] sm:$0xff] }
0x2dc8   :  { %v1656_v0 = vpack.c.bf16 %v1655_v63, %v1654_v62 }
0x2dca   :  { %2049 = vmatmul.mubr.msk.bf16.vlgmr.msra.gmra.mrb[36].mxu1 %vm162_vm4, %v1656_v0 }
0x2dcb   :  { %2264 = shalt.err (!%p2261_p6)
}
0x2dcc   :  { %s2265_s17 = scalar_lea.hbm %s2864_s10, 64 }
0x2dcd   :  { %p2266_p7 = scmp.ne.s32.totalorder %s2864_s10, %s2265_s17  ;;  %p2269_p8 = scmp.lt.u32.totalorder %s2265_s17, %s2864_s10 }
0x2dcf   :  { %p2271_p9 = pnand %p2269_p8, %p2266_p7 }
0x2dd1   :  { %2274 = shalt.err (!%p2271_p9)
}
0x2dd2   :  { %s2339_s18 = smov 2   ;;  %s2340_s25 = smov [#allocation11]  }
0x2dd3   :  { %1749 = dma.vmem_to_hbm [thread:$0]  %s1744_s27, 64, %s2864_s10, [#allocation10], %s2336_s20, %s2336_s20, %s2339_s18  }
0x2dd4   :  { %s1755_s26 = sshll.u32 %s2340_s25, 4  ;;  %s1756_s26 = int_to_ptr.vmem [resolvable:$true] %s1755_s26 }
0x2dd5   :  { %s2275_s28 = scalar_lea.vmem %s1756_s26, 64  ;;  %p2280_p11 = scmp.lt.s32.totalorder %s1756_s26, %s1756_s26 }
0x2dd6   :  { %p2276_p10 = scmp.ne.s32.totalorder %s1756_s26, %s2275_s28  ;;  %p2281_p12 = scmp.lt.s32.totalorder %s2275_s28, %s2275_s28 }
0x2dd8   :  { %p2282_p13 = por %p2281_p12, %p2280_p11 }
0x2dda   :  { %p2283_p0 = pnand %p2282_p13, %p2276_p10 }
0x2ddc   :  { %2286 = shalt.err (!%p2283_p0)
}
0x2ddd   :  { %s2287_s30 = scalar_lea.hbm %s2865_s11, 64 }
0x2dde   :  { %p2288_p1 = scmp.ne.s32.totalorder %s2865_s11, %s2287_s30  ;;  %p2291_p2 = scmp.lt.u32.totalorder %s2287_s30, %s2865_s11 }
0x2de0   :  { %p2293_p3 = pnand %p2291_p2, %p2288_p1 }
0x2de2   :  { %2296 = shalt.err (!%p2293_p3)
}
0x2de3   :  { %1761 = dma.vmem_to_hbm [thread:$0]  %s1756_s26, 64, %s2865_s11, [#allocation10], %s2336_s20, %s2336_s20, %s2339_s18  }
0x2de4   :  { %v1831_v2 = vld [vmem:[%s2862_s8] ss:$0 sm:$0xff]  ;;  %s2341_s7 = smov [#allocation8]  }
0x2de5   :  { %s1731_s27 = sshll.u32 %s2341_s7, 4  ;;  %s1732_s27 = int_to_ptr.vmem [resolvable:$true] %s1731_s27 }
0x2de6   :  { %s2297_s14 = scalar_lea.vmem %s1732_s27, 256  ;;  %p2302_p5 = scmp.lt.s32.totalorder %s1732_s27, %s1732_s27 }
0x2de7   :  { %p2298_p4 = scmp.ne.s32.totalorder %s1732_s27, %s2297_s14  ;;  %p2303_p6 = scmp.lt.s32.totalorder %s2297_s14, %s2297_s14 }
0x2de9   :  { %p2304_p7 = por %p2303_p6, %p2302_p5 }
0x2deb   :  { %p2305_p8 = pnand %p2304_p7, %p2298_p4 }
0x2e9d   :  { %v1717_v3 = vpop.f32.mrb[36].mxu1 }
0x2e9e   :  { %v1718_v4 = vadd.f32 %v1831_v2, %v1717_v3  ;;  %v2050_v5 = vpop.f32.mrb[37].mxu1 }
0x2e9f   :  { %v1720_v6 = vpop.f32.mrb[38].mxu1 }
0x2ea0   :  { %1724 = vst.msk [vmem:[#allocation8] sm:$0xff] %vm89_vm3, %v1718_v4  ;;  %v1721_v7 = vadd.f32 %v1831_v2, %v1720_v6  ;;  %v2051_v10 = vpop.f32.mrb[39].mxu1 }
0x2ea2   :  { %1725 = vst.msk [vmem:[#allocation8 + $0x8] sm:$0xff] %vm89_vm3, %v1721_v7 }
0x2ea3   :  { %2308 = shalt.err (!%p2305_p8)
}
0x2ea4   :  { %s2309_s20 = scalar_lea.hbm %s2863_s9, 256 }
0x2ea5   :  { %p2310_p9 = scmp.ne.s32.totalorder %s2863_s9, %s2309_s20  ;;  %p2313_p10 = scmp.lt.u32.totalorder %s2309_s20, %s2863_s9 }
0x2ea7   :  { %p2315_p11 = pnand %p2313_p10, %p2310_p9 }
0x2ea9   :  { %2318 = shalt.err (!%p2315_p11)
}
0x2eaa   :  { %s2342_s21 = smov 128   ;;  %s2343_s22 = smov 8  }
0x2eab   :  { %1737 = dma.vmem_to_hbm [thread:$0]  %s1732_s27, 256, %s2863_s9, [#allocation5], %s2342_s21, %s2342_s21, %s2343_s22  }
0x2eac   :  { %2323 = dma.done.wait [#allocation5], 256  }
0x2ead   :  { %2324 = vsyncadd [#allocation5], 4294967040 }
0x2eae   :  { %2325 = dma.done.wait [#allocation10], 128  }
0x2eaf   :  { %2326 = vsyncadd [#allocation10], 4294967168 }
0x2eb0   :  { %1771 = vsyncpa [#allocation4], 1 }
0x2eb1   :  { %1772 = vsyncpa [#allocation7], 1 }
0x2eb2   :  { %1773 = vsyncpa [#allocation5], 1 }
0x2eb3   :  { %1774 = vsyncpa [#allocation10], 1 }

</bundles_post_ra>
